<compile_context>
chip_gen: v7x
topology: tpu7x:2x2x1
jax: 0.10.0
libtpu: 0.0.40
codegen_flags: <defaults>
</compile_context>

<pallas_src>
import jax
import jax.numpy as jnp
from jax.experimental import pallas as pl
from jax.experimental.pallas import tpu as pltpu


def _round_up(n, m):
    return ((n + m - 1) // m) * m


def _rnn_fused_kernel(xs_ref, h0_ref, w1x_ref, w1h_ref, b1_ref,
                      w2_ref, b2_ref, w3_ref, b3_ref,
                      out_ref, hid_ref, p_scr):
    T, Bp, Ip = xs_ref.shape
    Hp = hid_ref.shape[-1]
    Op = out_ref.shape[-1]

    # ---------- Pass 1 (parallel over all T*Bp rows): P = x @ W1_x + b1 ----
    xs = xs_ref[...].reshape(T * Bp, Ip)                       # layout-trivial
    p = jnp.dot(xs, w1x_ref[...],
                preferred_element_type=jnp.float32) + b1_ref[...]
    p_scr[...] = p.reshape(T, Bp, Hp)

    # ---------- Pass 2 (serial recurrence; bf16 MXU operands, f32 accum) ----
    w1h = w1h_ref[...]                                         # bf16, resident
    w2 = w2_ref[...]                                           # bf16, resident
    b2 = b2_ref[...]

    def step(t, h):
        # hidden1 = relu(cat(x_t, h) @ W1 + b1) == relu(P[t] + h @ W1_h)
        h1 = jnp.dot(h.astype(jnp.bfloat16), w1h,
                     preferred_element_type=jnp.float32) + p_scr[t]
        h1 = jnp.maximum(h1, 0.0)
        # hidden2 = relu(hidden1 @ W2 + b2)
        h2 = jnp.dot(h1.astype(jnp.bfloat16), w2,
                     preferred_element_type=jnp.float32) + b2
        h2 = jnp.maximum(h2, 0.0)
        hid_ref[t] = h2                                        # per-step hidden
        return h2                                              # carry

    jax.lax.fori_loop(0, T, step, h0_ref[...], unroll=bool(T <= 32))

    # ---------- Pass 3 (parallel): output head + log-softmax for all T ------
    h2_all = hid_ref[...].reshape(T * Bp, Hp)
    # b3's padded lanes hold -1e30, so padded logits are masked for free.
    logits = jnp.dot(h2_all, w3_ref[...],
                     preferred_element_type=jnp.float32) + b3_ref[...]
    m = jnp.max(logits, axis=-1, keepdims=True)
    shifted = logits - m
    lse = jnp.log(jnp.sum(jnp.exp(shifted), axis=-1, keepdims=True))
    out_ref[...] = (shifted - lse).reshape(T, Bp, Op).astype(out_ref.dtype)


def rnn_model_forward_seq(xs, h0, params):
    """Run the RNN cell over a whole sequence inside ONE pallas_call.

    xs : [T, B, input_size]   per-step inputs
    h0 : [B, hidden_size]     initial hidden state
    returns (log_probs [T, B, output_size], hidden2 [T, B, hidden_size]).
    """
    w1, b1, w2, b2, w3, b3 = params
    T, B, input_size = xs.shape
    hidden_size = w2.shape[0]
    output_size = w3.shape[1]

    # Pad to TPU-friendly shapes: 8 sublanes (batch), 128 lanes (features).
    Bp = _round_up(B, 8)
    Ip = _round_up(input_size, 128)
    Hp = _round_up(hidden_size, 128)
    Op = _round_up(output_size, 128)

    # Split W1 into input / hidden parts (removes the wrapper-side concat and
    # lets the x-part be hoisted out of the recurrence).
    w1x, w1h = w1[:input_size], w1[input_size:]

    pad2 = lambda a, r, c: jnp.pad(a, ((0, r - a.shape[0]), (0, c - a.shape[1])))

    xs_p = jnp.pad(xs, ((0, 0), (0, Bp - B), (0, Ip - input_size)))
    h0_p = pad2(h0, Bp, Hp)
    w1x_p = pad2(w1x, Ip, Hp)                                  # f32 (pre-pass)
    w1h_p = pad2(w1h, Hp, Hp).astype(jnp.bfloat16)             # bf16 (recurrence)
    w2_p = pad2(w2, Hp, Hp).astype(jnp.bfloat16)               # bf16 (recurrence)
    w3_p = pad2(w3, Hp, Op)                                    # f32 (head)
    b1_p = pad2(b1.reshape(1, -1), 1, Hp)
    b2_p = pad2(b2.reshape(1, -1), 1, Hp)
    # Pad the extra logit lanes of b3 with -1e30: padded logits come out as
    # -1e30 so log-softmax normalization ignores them (no in-kernel mask).
    b3_p = jnp.pad(b3.reshape(1, -1), ((0, 0), (0, Op - output_size)),
                   constant_values=-1e30)

    out_p, hid_p = pl.pallas_call(
        _rnn_fused_kernel,
        out_shape=(
            jax.ShapeDtypeStruct((T, Bp, Op), jnp.float32),
            jax.ShapeDtypeStruct((T, Bp, Hp), jnp.float32),
        ),
        # No grid: single kernel invocation, everything resident in VMEM
        # (no per-step grid overhead, no double-buffered weight copies).
        scratch_shapes=[pltpu.VMEM((T, Bp, Hp), jnp.float32)],
        compiler_params=pltpu.CompilerParams(
            vmem_limit_bytes=32 * 1024 * 1024),
    )(xs_p, h0_p, w1x_p, w1h_p, b1_p, w2_p, b2_p, w3_p, b3_p)

    return out_p[:, :B, :output_size], hid_p[:, :B, :hidden_size]


def rnn_model_forward(x, h, params):
    """Exact module signature: forward(input, hidden_state) -> (output, hidden2)."""
    out, hid = rnn_model_forward_seq(x[None], h, params)
    return out[0], hid[0]


def init_params(key, input_size, hidden_size, output_size):
    """Deterministic init mimicking nn.Linear (uniform +-1/sqrt(fan_in)).
    Weights are stored as [in, out] (transpose of PyTorch's [out, in])."""
    ks = jax.random.split(key, 6)

    def linear(kw, kb, fan_in, fan_out):
        bound = 1.0 / jnp.sqrt(jnp.float32(fan_in))
        w = jax.random.uniform(kw, (fan_in, fan_out), jnp.float32,
                               minval=-bound, maxval=bound)
        b = jax.random.uniform(kb, (fan_out,), jnp.float32,
                               minval=-bound, maxval=bound)
        return w, b

    w1, b1 = linear(ks[0], ks[1], input_size + hidden_size, hidden_size)
    w2, b2 = linear(ks[2], ks[3], hidden_size, hidden_size)
    w3, b3 = linear(ks[4], ks[5], hidden_size, output_size)
    return (w1, b1, w2, b2, w3, b3)


def _ref_forward(x, h, params):
    """Pure-JAX f32 reference of RNNModel.forward (for correctness check)."""
    w1, b1, w2, b2, w3, b3 = params
    combined = jnp.concatenate([x, h], axis=1)
    h1 = jnp.maximum(combined @ w1 + b1, 0.0)
    h2 = jnp.maximum(h1 @ w2 + b2, 0.0)
    logits = h2 @ w3 + b3
    return jax.nn.log_softmax(logits, axis=1), h2


if __name__ == "__main__":
    input_size, hidden_size, output_size = 16, 32, 8
    batch, seq_len = 2, 8

    key = jax.random.PRNGKey(0)
    k_x, k_p = jax.random.split(key)

    params = init_params(k_p, input_size, hidden_size, output_size)
    xs = jax.random.normal(k_x, (seq_len, batch, input_size), jnp.float32)
    h0 = jnp.zeros((batch, hidden_size), jnp.float32)   # init_hidden(batch)

    # Fused sequence: pre-pass + recurrence + softmax head in one pallas_call.
    outs, hids = jax.jit(rnn_model_forward_seq)(xs, h0, params)
    jax.block_until_ready((outs, hids))

    # Single step (original module signature), T=1 case of the same kernel.
    out1, h1 = rnn_model_forward(xs[0], h0, params)
    jax.block_until_ready((out1, h1))

    # Pure-JAX f32 reference, step by step.
    ref_outs, ref_hids = [], []
    h = h0
    for t in range(seq_len):
        o, h = _ref_forward(xs[t], h, params)
        ref_outs.append(o)
        ref_hids.append(h)
    ref_outs = jnp.stack(ref_outs)
    ref_hids = jnp.stack(ref_hids)

    assert outs.shape == (seq_len, batch, output_size)
    assert hids.shape == (seq_len, batch, hidden_size)
    # bf16 MXU operands in the recurrence (f32 accumulation) -> loosened
    # absolute tolerance vs. the pure-f32 reference, per the perf review.
    assert bool(jnp.all(jnp.abs(outs - ref_outs) < 1e-1))
    assert bool(jnp.all(jnp.abs(hids - ref_hids) < 1e-1))
    assert bool(jnp.all(jnp.abs(out1 - ref_outs[0]) < 1e-1))
    assert bool(jnp.all(jnp.abs(h1 - ref_hids[0]) < 1e-1))
    # log-softmax normalization is exact f32: rows sum (in prob space) to ~1.
    assert bool(jnp.all(jnp.abs(jnp.sum(jnp.exp(outs), axis=-1) - 1.0) < 1e-3))

    print("KERNEL_OK")
</pallas_src>

<mosaic_0001>
module attributes {stable_mosaic.version = 11 : i64} {
  func.func @_rnn_fused_kernel(%arg0: memref<8x8x128xf32, #tpu.memory_space<vmem>>, %arg1: memref<8x128xf32, #tpu.memory_space<vmem>>, %arg2: memref<128x128xf32, #tpu.memory_space<vmem>>, %arg3: memref<128x128xbf16, #tpu.memory_space<vmem>>, %arg4: memref<1x128xf32, #tpu.memory_space<vmem>>, %arg5: memref<128x128xbf16, #tpu.memory_space<vmem>>, %arg6: memref<1x128xf32, #tpu.memory_space<vmem>>, %arg7: memref<128x128xf32, #tpu.memory_space<vmem>>, %arg8: memref<1x128xf32, #tpu.memory_space<vmem>>, %arg9: memref<8x8x128xf32, #tpu.memory_space<vmem>>, %arg10: memref<8x8x128xf32, #tpu.memory_space<vmem>>, %arg11: memref<8x8x128xf32, #tpu.memory_space<vmem>>) attributes {dimension_semantics = [], scalar_prefetch = 0 : i64, scratch_operands = 1 : i64, tpu.core_type = #tpu.core_type<tc>} {
    %c0 = arith.constant 0 : index
    %c0_0 = arith.constant 0 : index
    %c0_1 = arith.constant 0 : index
    %0 = vector.load %arg0[%c0, %c0_0, %c0_1] : memref<8x8x128xf32, #tpu.memory_space<vmem>>, vector<8x8x128xf32>
    %1 = vector.shape_cast %0 : vector<8x8x128xf32> to vector<64x128xf32>
    %c0_2 = arith.constant 0 : index
    %c0_3 = arith.constant 0 : index
    %2 = vector.load %arg2[%c0_2, %c0_3] : memref<128x128xf32, #tpu.memory_space<vmem>>, vector<128x128xf32>
    %cst = arith.constant dense<0.000000e+00> : vector<64x128xf32>
    %3 = tpu.matmul %1, %2, %cst {dimension_numbers = #tpu.dot_dimension_numbers<[1], [0], [0], [1], [0, 0, 1, 1], [], []>} : vector<64x128xf32>, vector<128x128xf32>, vector<64x128xf32> -> vector<64x128xf32>
    %c0_4 = arith.constant 0 : index
    %c0_5 = arith.constant 0 : index
    %4 = vector.load %arg4[%c0_4, %c0_5] : memref<1x128xf32, #tpu.memory_space<vmem>>, vector<1x128xf32>
    %5 = vector.broadcast %4 : vector<1x128xf32> to vector<64x128xf32>
    %6 = arith.addf %3, %5 : vector<64x128xf32>
    %7 = vector.shape_cast %6 : vector<64x128xf32> to vector<8x8x128xf32>
    %c0_6 = arith.constant 0 : index
    %c0_7 = arith.constant 0 : index
    %c0_8 = arith.constant 0 : index
    %8 = vector.load %arg11[%c0_6, %c0_7, %c0_8] : memref<8x8x128xf32, #tpu.memory_space<vmem>>, vector<8x8x128xf32>
    tpu.vector_store %arg11[%c0_6, %c0_7, %c0_8], %7 {strides = array<i32>} : memref<8x8x128xf32, #tpu.memory_space<vmem>>, vector<8x8x128xf32>,
    %c0_9 = arith.constant 0 : index
    %c0_10 = arith.constant 0 : index
    %9 = vector.load %arg3[%c0_9, %c0_10] : memref<128x128xbf16, #tpu.memory_space<vmem>>, vector<128x128xbf16>
    %c0_11 = arith.constant 0 : index
    %c0_12 = arith.constant 0 : index
    %10 = vector.load %arg5[%c0_11, %c0_12] : memref<128x128xbf16, #tpu.memory_space<vmem>>, vector<128x128xbf16>
    %c0_13 = arith.constant 0 : index
    %c0_14 = arith.constant 0 : index
    %11 = vector.load %arg6[%c0_13, %c0_14] : memref<1x128xf32, #tpu.memory_space<vmem>>, vector<1x128xf32>
    %c0_15 = arith.constant 0 : index
    %c0_16 = arith.constant 0 : index
    %12 = vector.load %arg1[%c0_15, %c0_16] : memref<8x128xf32, #tpu.memory_space<vmem>>, vector<8x128xf32>
    %c0_i32 = arith.constant 0 : i32
    %13 = arith.truncf %12 : vector<8x128xf32> to vector<8x128xbf16>
    %cst_17 = arith.constant dense<0.000000e+00> : vector<8x128xf32>
    %14 = tpu.matmul %13, %9, %cst_17 {dimension_numbers = #tpu.dot_dimension_numbers<[1], [0], [0], [1], [0, 0, 1, 1], [], []>} : vector<8x128xbf16>, vector<128x128xbf16>, vector<8x128xf32> -> vector<8x128xf32>
    %15 = arith.index_cast %c0_i32 : i32 to index
    %c0_18 = arith.constant 0 : index
    %c0_19 = arith.constant 0 : index
    %16 = vector.load %arg11[%15, %c0_18, %c0_19] : memref<8x8x128xf32, #tpu.memory_space<vmem>>, vector<1x8x128xf32>
    %17 = vector.shape_cast %16 : vector<1x8x128xf32> to vector<8x128xf32>
    %18 = arith.addf %14, %17 : vector<8x128xf32>
    %cst_20 = arith.constant 0.000000e+00 : f32
    %19 = vector.broadcast %cst_20 : f32 to vector<8x128xf32>
    %20 = arith.maximumf %18, %19 : vector<8x128xf32>
    %21 = arith.truncf %20 : vector<8x128xf32> to vector<8x128xbf16>
    %cst_21 = arith.constant dense<0.000000e+00> : vector<8x128xf32>
    %22 = tpu.matmul %21, %10, %cst_21 {dimension_numbers = #tpu.dot_dimension_numbers<[1], [0], [0], [1], [0, 0, 1, 1], [], []>} : vector<8x128xbf16>, vector<128x128xbf16>, vector<8x128xf32> -> vector<8x128xf32>
    %23 = vector.broadcast %11 : vector<1x128xf32> to vector<8x128xf32>
    %24 = arith.addf %22, %23 : vector<8x128xf32>
    %cst_22 = arith.constant 0.000000e+00 : f32
    %25 = vector.broadcast %cst_22 : f32 to vector<8x128xf32>
    %26 = arith.maximumf %24, %25 : vector<8x128xf32>
    %27 = arith.index_cast %c0_i32 : i32 to index
    %c0_23 = arith.constant 0 : index
    %c0_24 = arith.constant 0 : index
    %28 = vector.load %arg10[%27, %c0_23, %c0_24] : memref<8x8x128xf32, #tpu.memory_space<vmem>>, vector<1x8x128xf32>
    %29 = vector.shape_cast %28 : vector<1x8x128xf32> to vector<8x128xf32>
    %30 = vector.shape_cast %26 : vector<8x128xf32> to vector<1x8x128xf32>
    tpu.vector_store %arg10[%27, %c0_23, %c0_24], %30 {strides = array<i32>} : memref<8x8x128xf32, #tpu.memory_space<vmem>>, vector<1x8x128xf32>,
    %c1_i32 = arith.constant 1 : i32
    %31 = arith.truncf %26 : vector<8x128xf32> to vector<8x128xbf16>
    %cst_25 = arith.constant dense<0.000000e+00> : vector<8x128xf32>
    %32 = tpu.matmul %31, %9, %cst_25 {dimension_numbers = #tpu.dot_dimension_numbers<[1], [0], [0], [1], [0, 0, 1, 1], [], []>} : vector<8x128xbf16>, vector<128x128xbf16>, vector<8x128xf32> -> vector<8x128xf32>
    %33 = arith.index_cast %c1_i32 : i32 to index
    %c0_26 = arith.constant 0 : index
    %c0_27 = arith.constant 0 : index
    %34 = vector.load %arg11[%33, %c0_26, %c0_27] : memref<8x8x128xf32, #tpu.memory_space<vmem>>, vector<1x8x128xf32>
    %35 = vector.shape_cast %34 : vector<1x8x128xf32> to vector<8x128xf32>
    %36 = arith.addf %32, %35 : vector<8x128xf32>
    %cst_28 = arith.constant 0.000000e+00 : f32
    %37 = vector.broadcast %cst_28 : f32 to vector<8x128xf32>
    %38 = arith.maximumf %36, %37 : vector<8x128xf32>
    %39 = arith.truncf %38 : vector<8x128xf32> to vector<8x128xbf16>
    %cst_29 = arith.constant dense<0.000000e+00> : vector<8x128xf32>
    %40 = tpu.matmul %39, %10, %cst_29 {dimension_numbers = #tpu.dot_dimension_numbers<[1], [0], [0], [1], [0, 0, 1, 1], [], []>} : vector<8x128xbf16>, vector<128x128xbf16>, vector<8x128xf32> -> vector<8x128xf32>
    %41 = vector.broadcast %11 : vector<1x128xf32> to vector<8x128xf32>
    %42 = arith.addf %40, %41 : vector<8x128xf32>
    %cst_30 = arith.constant 0.000000e+00 : f32
    %43 = vector.broadcast %cst_30 : f32 to vector<8x128xf32>
    %44 = arith.maximumf %42, %43 : vector<8x128xf32>
    %45 = arith.index_cast %c1_i32 : i32 to index
    %c0_31 = arith.constant 0 : index
    %c0_32 = arith.constant 0 : index
    %46 = vector.load %arg10[%45, %c0_31, %c0_32] : memref<8x8x128xf32, #tpu.memory_space<vmem>>, vector<1x8x128xf32>
    %47 = vector.shape_cast %46 : vector<1x8x128xf32> to vector<8x128xf32>
    %48 = vector.shape_cast %44 : vector<8x128xf32> to vector<1x8x128xf32>
    tpu.vector_store %arg10[%45, %c0_31, %c0_32], %48 {strides = array<i32>} : memref<8x8x128xf32, #tpu.memory_space<vmem>>, vector<1x8x128xf32>,
    %c2_i32 = arith.constant 2 : i32
    %49 = arith.truncf %44 : vector<8x128xf32> to vector<8x128xbf16>
    %cst_33 = arith.constant dense<0.000000e+00> : vector<8x128xf32>
    %50 = tpu.matmul %49, %9, %cst_33 {dimension_numbers = #tpu.dot_dimension_numbers<[1], [0], [0], [1], [0, 0, 1, 1], [], []>} : vector<8x128xbf16>, vector<128x128xbf16>, vector<8x128xf32> -> vector<8x128xf32>
    %51 = arith.index_cast %c2_i32 : i32 to index
    %c0_34 = arith.constant 0 : index
    %c0_35 = arith.constant 0 : index
    %52 = vector.load %arg11[%51, %c0_34, %c0_35] : memref<8x8x128xf32, #tpu.memory_space<vmem>>, vector<1x8x128xf32>
    %53 = vector.shape_cast %52 : vector<1x8x128xf32> to vector<8x128xf32>
    %54 = arith.addf %50, %53 : vector<8x128xf32>
    %cst_36 = arith.constant 0.000000e+00 : f32
    %55 = vector.broadcast %cst_36 : f32 to vector<8x128xf32>
    %56 = arith.maximumf %54, %55 : vector<8x128xf32>
    %57 = arith.truncf %56 : vector<8x128xf32> to vector<8x128xbf16>
    %cst_37 = arith.constant dense<0.000000e+00> : vector<8x128xf32>
    %58 = tpu.matmul %57, %10, %cst_37 {dimension_numbers = #tpu.dot_dimension_numbers<[1], [0], [0], [1], [0, 0, 1, 1], [], []>} : vector<8x128xbf16>, vector<128x128xbf16>, vector<8x128xf32> -> vector<8x128xf32>
    %59 = vector.broadcast %11 : vector<1x128xf32> to vector<8x128xf32>
    %60 = arith.addf %58, %59 : vector<8x128xf32>
    %cst_38 = arith.constant 0.000000e+00 : f32
    %61 = vector.broadcast %cst_38 : f32 to vector<8x128xf32>
    %62 = arith.maximumf %60, %61 : vector<8x128xf32>
    %63 = arith.index_cast %c2_i32 : i32 to index
    %c0_39 = arith.constant 0 : index
    %c0_40 = arith.constant 0 : index
    %64 = vector.load %arg10[%63, %c0_39, %c0_40] : memref<8x8x128xf32, #tpu.memory_space<vmem>>, vector<1x8x128xf32>
    %65 = vector.shape_cast %64 : vector<1x8x128xf32> to vector<8x128xf32>
    %66 = vector.shape_cast %62 : vector<8x128xf32> to vector<1x8x128xf32>
    tpu.vector_store %arg10[%63, %c0_39, %c0_40], %66 {strides = array<i32>} : memref<8x8x128xf32, #tpu.memory_space<vmem>>, vector<1x8x128xf32>,
    %c3_i32 = arith.constant 3 : i32
    %67 = arith.truncf %62 : vector<8x128xf32> to vector<8x128xbf16>
    %cst_41 = arith.constant dense<0.000000e+00> : vector<8x128xf32>
    %68 = tpu.matmul %67, %9, %cst_41 {dimension_numbers = #tpu.dot_dimension_numbers<[1], [0], [0], [1], [0, 0, 1, 1], [], []>} : vector<8x128xbf16>, vector<128x128xbf16>, vector<8x128xf32> -> vector<8x128xf32>
    %69 = arith.index_cast %c3_i32 : i32 to index
    %c0_42 = arith.constant 0 : index
    %c0_43 = arith.constant 0 : index
    %70 = vector.load %arg11[%69, %c0_42, %c0_43] : memref<8x8x128xf32, #tpu.memory_space<vmem>>, vector<1x8x128xf32>
    %71 = vector.shape_cast %70 : vector<1x8x128xf32> to vector<8x128xf32>
    %72 = arith.addf %68, %71 : vector<8x128xf32>
    %cst_44 = arith.constant 0.000000e+00 : f32
    %73 = vector.broadcast %cst_44 : f32 to vector<8x128xf32>
    %74 = arith.maximumf %72, %73 : vector<8x128xf32>
    %75 = arith.truncf %74 : vector<8x128xf32> to vector<8x128xbf16>
    %cst_45 = arith.constant dense<0.000000e+00> : vector<8x128xf32>
    %76 = tpu.matmul %75, %10, %cst_45 {dimension_numbers = #tpu.dot_dimension_numbers<[1], [0], [0], [1], [0, 0, 1, 1], [], []>} : vector<8x128xbf16>, vector<128x128xbf16>, vector<8x128xf32> -> vector<8x128xf32>
    %77 = vector.broadcast %11 : vector<1x128xf32> to vector<8x128xf32>
    %78 = arith.addf %76, %77 : vector<8x128xf32>
    %cst_46 = arith.constant 0.000000e+00 : f32
    %79 = vector.broadcast %cst_46 : f32 to vector<8x128xf32>
    %80 = arith.maximumf %78, %79 : vector<8x128xf32>
    %81 = arith.index_cast %c3_i32 : i32 to index
    %c0_47 = arith.constant 0 : index
    %c0_48 = arith.constant 0 : index
    %82 = vector.load %arg10[%81, %c0_47, %c0_48] : memref<8x8x128xf32, #tpu.memory_space<vmem>>, vector<1x8x128xf32>
    %83 = vector.shape_cast %82 : vector<1x8x128xf32> to vector<8x128xf32>
    %84 = vector.shape_cast %80 : vector<8x128xf32> to vector<1x8x128xf32>
    tpu.vector_store %arg10[%81, %c0_47, %c0_48], %84 {strides = array<i32>} : memref<8x8x128xf32, #tpu.memory_space<vmem>>, vector<1x8x128xf32>,
    %c4_i32 = arith.constant 4 : i32
    %85 = arith.truncf %80 : vector<8x128xf32> to vector<8x128xbf16>
    %cst_49 = arith.constant dense<0.000000e+00> : vector<8x128xf32>
    %86 = tpu.matmul %85, %9, %cst_49 {dimension_numbers = #tpu.dot_dimension_numbers<[1], [0], [0], [1], [0, 0, 1, 1], [], []>} : vector<8x128xbf16>, vector<128x128xbf16>, vector<8x128xf32> -> vector<8x128xf32>
    %87 = arith.index_cast %c4_i32 : i32 to index
    %c0_50 = arith.constant 0 : index
    %c0_51 = arith.constant 0 : index
    %88 = vector.load %arg11[%87, %c0_50, %c0_51] : memref<8x8x128xf32, #tpu.memory_space<vmem>>, vector<1x8x128xf32>
    %89 = vector.shape_cast %88 : vector<1x8x128xf32> to vector<8x128xf32>
    %90 = arith.addf %86, %89 : vector<8x128xf32>
    %cst_52 = arith.constant 0.000000e+00 : f32
    %91 = vector.broadcast %cst_52 : f32 to vector<8x128xf32>
    %92 = arith.maximumf %90, %91 : vector<8x128xf32>
    %93 = arith.truncf %92 : vector<8x128xf32> to vector<8x128xbf16>
    %cst_53 = arith.constant dense<0.000000e+00> : vector<8x128xf32>
    %94 = tpu.matmul %93, %10, %cst_53 {dimension_numbers = #tpu.dot_dimension_numbers<[1], [0], [0], [1], [0, 0, 1, 1], [], []>} : vector<8x128xbf16>, vector<128x128xbf16>, vector<8x128xf32> -> vector<8x128xf32>
    %95 = vector.broadcast %11 : vector<1x128xf32> to vector<8x128xf32>
    %96 = arith.addf %94, %95 : vector<8x128xf32>
    %cst_54 = arith.constant 0.000000e+00 : f32
    %97 = vector.broadcast %cst_54 : f32 to vector<8x128xf32>
    %98 = arith.maximumf %96, %97 : vector<8x128xf32>
    %99 = arith.index_cast %c4_i32 : i32 to index
    %c0_55 = arith.constant 0 : index
    %c0_56 = arith.constant 0 : index
    %100 = vector.load %arg10[%99, %c0_55, %c0_56] : memref<8x8x128xf32, #tpu.memory_space<vmem>>, vector<1x8x128xf32>
    %101 = vector.shape_cast %100 : vector<1x8x128xf32> to vector<8x128xf32>
    %102 = vector.shape_cast %98 : vector<8x128xf32> to vector<1x8x128xf32>
    tpu.vector_store %arg10[%99, %c0_55, %c0_56], %102 {strides = array<i32>} : memref<8x8x128xf32, #tpu.memory_space<vmem>>, vector<1x8x128xf32>,
    %c5_i32 = arith.constant 5 : i32
    %103 = arith.truncf %98 : vector<8x128xf32> to vector<8x128xbf16>
    %cst_57 = arith.constant dense<0.000000e+00> : vector<8x128xf32>
    %104 = tpu.matmul %103, %9, %cst_57 {dimension_numbers = #tpu.dot_dimension_numbers<[1], [0], [0], [1], [0, 0, 1, 1], [], []>} : vector<8x128xbf16>, vector<128x128xbf16>, vector<8x128xf32> -> vector<8x128xf32>
    %105 = arith.index_cast %c5_i32 : i32 to index
    %c0_58 = arith.constant 0 : index
    %c0_59 = arith.constant 0 : index
    %106 = vector.load %arg11[%105, %c0_58, %c0_59] : memref<8x8x128xf32, #tpu.memory_space<vmem>>, vector<1x8x128xf32>
    %107 = vector.shape_cast %106 : vector<1x8x128xf32> to vector<8x128xf32>
    %108 = arith.addf %104, %107 : vector<8x128xf32>
    %cst_60 = arith.constant 0.000000e+00 : f32
    %109 = vector.broadcast %cst_60 : f32 to vector<8x128xf32>
    %110 = arith.maximumf %108, %109 : vector<8x128xf32>
    %111 = arith.truncf %110 : vector<8x128xf32> to vector<8x128xbf16>
    %cst_61 = arith.constant dense<0.000000e+00> : vector<8x128xf32>
    %112 = tpu.matmul %111, %10, %cst_61 {dimension_numbers = #tpu.dot_dimension_numbers<[1], [0], [0], [1], [0, 0, 1, 1], [], []>} : vector<8x128xbf16>, vector<128x128xbf16>, vector<8x128xf32> -> vector<8x128xf32>
    %113 = vector.broadcast %11 : vector<1x128xf32> to vector<8x128xf32>
    %114 = arith.addf %112, %113 : vector<8x128xf32>
    %cst_62 = arith.constant 0.000000e+00 : f32
    %115 = vector.broadcast %cst_62 : f32 to vector<8x128xf32>
    %116 = arith.maximumf %114, %115 : vector<8x128xf32>
    %117 = arith.index_cast %c5_i32 : i32 to index
    %c0_63 = arith.constant 0 : index
    %c0_64 = arith.constant 0 : index
    %118 = vector.load %arg10[%117, %c0_63, %c0_64] : memref<8x8x128xf32, #tpu.memory_space<vmem>>, vector<1x8x128xf32>
    %119 = vector.shape_cast %118 : vector<1x8x128xf32> to vector<8x128xf32>
    %120 = vector.shape_cast %116 : vector<8x128xf32> to vector<1x8x128xf32>
    tpu.vector_store %arg10[%117, %c0_63, %c0_64], %120 {strides = array<i32>} : memref<8x8x128xf32, #tpu.memory_space<vmem>>, vector<1x8x128xf32>,
    %c6_i32 = arith.constant 6 : i32
    %121 = arith.truncf %116 : vector<8x128xf32> to vector<8x128xbf16>
    %cst_65 = arith.constant dense<0.000000e+00> : vector<8x128xf32>
    %122 = tpu.matmul %121, %9, %cst_65 {dimension_numbers = #tpu.dot_dimension_numbers<[1], [0], [0], [1], [0, 0, 1, 1], [], []>} : vector<8x128xbf16>, vector<128x128xbf16>, vector<8x128xf32> -> vector<8x128xf32>
    %123 = arith.index_cast %c6_i32 : i32 to index
    %c0_66 = arith.constant 0 : index
    %c0_67 = arith.constant 0 : index
    %124 = vector.load %arg11[%123, %c0_66, %c0_67] : memref<8x8x128xf32, #tpu.memory_space<vmem>>, vector<1x8x128xf32>
    %125 = vector.shape_cast %124 : vector<1x8x128xf32> to vector<8x128xf32>
    %126 = arith.addf %122, %125 : vector<8x128xf32>
    %cst_68 = arith.constant 0.000000e+00 : f32
    %127 = vector.broadcast %cst_68 : f32 to vector<8x128xf32>
    %128 = arith.maximumf %126, %127 : vector<8x128xf32>
    %129 = arith.truncf %128 : vector<8x128xf32> to vector<8x128xbf16>
    %cst_69 = arith.constant dense<0.000000e+00> : vector<8x128xf32>
    %130 = tpu.matmul %129, %10, %cst_69 {dimension_numbers = #tpu.dot_dimension_numbers<[1], [0], [0], [1], [0, 0, 1, 1], [], []>} : vector<8x128xbf16>, vector<128x128xbf16>, vector<8x128xf32> -> vector<8x128xf32>
    %131 = vector.broadcast %11 : vector<1x128xf32> to vector<8x128xf32>
    %132 = arith.addf %130, %131 : vector<8x128xf32>
    %cst_70 = arith.constant 0.000000e+00 : f32
    %133 = vector.broadcast %cst_70 : f32 to vector<8x128xf32>
    %134 = arith.maximumf %132, %133 : vector<8x128xf32>
    %135 = arith.index_cast %c6_i32 : i32 to index
    %c0_71 = arith.constant 0 : index
    %c0_72 = arith.constant 0 : index
    %136 = vector.load %arg10[%135, %c0_71, %c0_72] : memref<8x8x128xf32, #tpu.memory_space<vmem>>, vector<1x8x128xf32>
    %137 = vector.shape_cast %136 : vector<1x8x128xf32> to vector<8x128xf32>
    %138 = vector.shape_cast %134 : vector<8x128xf32> to vector<1x8x128xf32>
    tpu.vector_store %arg10[%135, %c0_71, %c0_72], %138 {strides = array<i32>} : memref<8x8x128xf32, #tpu.memory_space<vmem>>, vector<1x8x128xf32>,
    %c7_i32 = arith.constant 7 : i32
    %139 = arith.truncf %134 : vector<8x128xf32> to vector<8x128xbf16>
    %cst_73 = arith.constant dense<0.000000e+00> : vector<8x128xf32>
    %140 = tpu.matmul %139, %9, %cst_73 {dimension_numbers = #tpu.dot_dimension_numbers<[1], [0], [0], [1], [0, 0, 1, 1], [], []>} : vector<8x128xbf16>, vector<128x128xbf16>, vector<8x128xf32> -> vector<8x128xf32>
    %141 = arith.index_cast %c7_i32 : i32 to index
    %c0_74 = arith.constant 0 : index
    %c0_75 = arith.constant 0 : index
    %142 = vector.load %arg11[%141, %c0_74, %c0_75] : memref<8x8x128xf32, #tpu.memory_space<vmem>>, vector<1x8x128xf32>
    %143 = vector.shape_cast %142 : vector<1x8x128xf32> to vector<8x128xf32>
    %144 = arith.addf %140, %143 : vector<8x128xf32>
    %cst_76 = arith.constant 0.000000e+00 : f32
    %145 = vector.broadcast %cst_76 : f32 to vector<8x128xf32>
    %146 = arith.maximumf %144, %145 : vector<8x128xf32>
    %147 = arith.truncf %146 : vector<8x128xf32> to vector<8x128xbf16>
    %cst_77 = arith.constant dense<0.000000e+00> : vector<8x128xf32>
    %148 = tpu.matmul %147, %10, %cst_77 {dimension_numbers = #tpu.dot_dimension_numbers<[1], [0], [0], [1], [0, 0, 1, 1], [], []>} : vector<8x128xbf16>, vector<128x128xbf16>, vector<8x128xf32> -> vector<8x128xf32>
    %149 = vector.broadcast %11 : vector<1x128xf32> to vector<8x128xf32>
    %150 = arith.addf %148, %149 : vector<8x128xf32>
    %cst_78 = arith.constant 0.000000e+00 : f32
    %151 = vector.broadcast %cst_78 : f32 to vector<8x128xf32>
    %152 = arith.maximumf %150, %151 : vector<8x128xf32>
    %153 = arith.index_cast %c7_i32 : i32 to index
    %c0_79 = arith.constant 0 : index
    %c0_80 = arith.constant 0 : index
    %154 = vector.load %arg10[%153, %c0_79, %c0_80] : memref<8x8x128xf32, #tpu.memory_space<vmem>>, vector<1x8x128xf32>
    %155 = vector.shape_cast %154 : vector<1x8x128xf32> to vector<8x128xf32>
    %156 = vector.shape_cast %152 : vector<8x128xf32> to vector<1x8x128xf32>
    tpu.vector_store %arg10[%153, %c0_79, %c0_80], %156 {strides = array<i32>} : memref<8x8x128xf32, #tpu.memory_space<vmem>>, vector<1x8x128xf32>,
    %c8_i32 = arith.constant 8 : i32
    %c0_81 = arith.constant 0 : index
    %c0_82 = arith.constant 0 : index
    %c0_83 = arith.constant 0 : index
    %157 = vector.load %arg10[%c0_81, %c0_82, %c0_83] : memref<8x8x128xf32, #tpu.memory_space<vmem>>, vector<8x8x128xf32>
    %158 = vector.shape_cast %157 : vector<8x8x128xf32> to vector<64x128xf32>
    %c0_84 = arith.constant 0 : index
    %c0_85 = arith.constant 0 : index
    %159 = vector.load %arg7[%c0_84, %c0_85] : memref<128x128xf32, #tpu.memory_space<vmem>>, vector<128x128xf32>
    %cst_86 = arith.constant dense<0.000000e+00> : vector<64x128xf32>
    %160 = tpu.matmul %158, %159, %cst_86 {dimension_numbers = #tpu.dot_dimension_numbers<[1], [0], [0], [1], [0, 0, 1, 1], [], []>} : vector<64x128xf32>, vector<128x128xf32>, vector<64x128xf32> -> vector<64x128xf32>
    %c0_87 = arith.constant 0 : index
    %c0_88 = arith.constant 0 : index
    %161 = vector.load %arg8[%c0_87, %c0_88] : memref<1x128xf32, #tpu.memory_space<vmem>>, vector<1x128xf32>
    %162 = vector.broadcast %161 : vector<1x128xf32> to vector<64x128xf32>
    %163 = arith.addf %160, %162 : vector<64x128xf32>
    %cst_89 = arith.constant dense<0xFF800000> : vector<64xf32>
    %164 = vector.multi_reduction <maximumf>, %163, %cst_89 [1] : vector<64x128xf32> to vector<64xf32>
    %165 = vector.shape_cast %164 : vector<64xf32> to vector<64x1xf32>
    %166 = vector.broadcast %165 : vector<64x1xf32> to vector<64x128xf32>
    %167 = arith.subf %163, %166 : vector<64x128xf32>
    %168 = math.exp %167 : vector<64x128xf32>
    %cst_90 = arith.constant dense<0.000000e+00> : vector<64xf32>
    %169 = vector.multi_reduction <add>, %168, %cst_90 [1] : vector<64x128xf32> to vector<64xf32>
    %170 = vector.shape_cast %169 : vector<64xf32> to vector<64x1xf32>
    %171 = math.log %170 : vector<64x1xf32>
    %172 = vector.broadcast %171 : vector<64x1xf32> to vector<64x128xf32>
    %173 = arith.subf %167, %172 : vector<64x128xf32>
    %174 = vector.shape_cast %173 : vector<64x128xf32> to vector<8x8x128xf32>
    %c0_91 = arith.constant 0 : index
    %c0_92 = arith.constant 0 : index
    %c0_93 = arith.constant 0 : index
    %175 = vector.load %arg9[%c0_91, %c0_92, %c0_93] : memref<8x8x128xf32, #tpu.memory_space<vmem>>, vector<8x8x128xf32>
    tpu.vector_store %arg9[%c0_91, %c0_92, %c0_93], %174 {strides = array<i32>} : memref<8x8x128xf32, #tpu.memory_space<vmem>>, vector<8x8x128xf32>,
    return
  }
}

</mosaic_0001>

<bundles_post_ra>
// kernel: rnn_model_forward_seq.1
= control target key start
LH: loop header
LB: loop body
LE: loop exit
PB: predicated region body
PF: predicated region fallthrough
CT: control target
= control target key end

     0   :  { %v1989_v2 = vmov 0.0   ;;  %vm1990_vm0 = vmmov 0   ;;  %s2692_s2 = inlined_call_operand.vmem [shape: f32[128,128], index: 2, kind: input, shape index: {}]   ;;  %s2693_s3 = inlined_call_operand.vmem [shape: bf16[128,128], index: 3, kind: input, shape index: {}]   ;;  %s2694_s0 = inlined_call_operand.vmem [shape: f32[8,8,128], index: 0, kind: input, shape index: {}]   ;;  %s2695_s5 = inlined_call_operand.vmem [shape: bf16[128,128], index: 5, kind: input, shape index: {}]   ;;  %s2696_s1 = inlined_call_operand.vmem [shape: f32[8,128], index: 1, kind: input, shape index: {}]   ;;  %s2697_s4 = inlined_call_operand.vmem [shape: f32[1,128], index: 4, kind: input, shape index: {}]   ;;  %s2698_s6 = inlined_call_operand.vmem [shape: f32[1,128], index: 6, kind: input, shape index: {}]   ;;  %s2699_s10 = inlined_call_operand.vmem [shape: f32[8,8,128], index: 10, kind: output, shape index: {1}]   ;;  %s2700_s7 = inlined_call_operand.vmem [shape: f32[128,128], index: 7, kind: input, shape index: {}]   ;;  %s2701_s8 = inlined_call_operand.vmem [shape: f32[1,128], index: 8, kind: input, shape index: {}]   ;;  %s2702_s9 = inlined_call_operand.vmem [shape: f32[8,8,128], index: 9, kind: output, shape index: {0}]  }
   0x1   :  { %v43_v0 = vld [vmem:[%s2692_s2] sm:$0xff]  ;;  %v44_v1 = vld [vmem:[%s2692_s2 + $0x8] sm:$0xff]  ;;  %1511 = vmatprep.subr.bf16.mxu1 %v1989_v2  ;;  %1527 = vmatprep.mubr.msk.bf16.mxu1 %vm1990_vm0, %v1989_v2  ;;  %v45_v5 = vld [vmem:[%s2692_s2 + $0x10] sm:$0xff] }
   0x2   :  { %v1875_v3 = vpack.c.bf16 %v44_v1, %v43_v0  ;;  %v2058_v4 = vld [vmem:[%s2693_s3] sm:$0xff]   ;;  %v46_v6 = vld [vmem:[%s2692_s2 + $0x18] sm:$0xff]  ;;  %v2070_v8 = vld [vmem:[%s2693_s3 + $0x8] sm:$0xff]  }
   0x3   :  { %1512 = vmatpush3.bf16.msra.mxu1 %v2058_v4  ;;  %v1879_v7 = vpack.c.bf16 %v46_v6, %v45_v5  ;;  %v47_v9 = vld [vmem:[%s2692_s2 + $0x20] sm:$0xff]  ;;  %v48_v10 = vld [vmem:[%s2692_s2 + $0x28] sm:$0xff]  ;;  %v49_v12 = vld [vmem:[%s2692_s2 + $0x30] sm:$0xff] }
   0x4   :  { %1876 = vmatprep.subr.bf16.mxu0 %v1875_v3  ;;  %1513 = vmatprep.subr.bf16.mxu1 %v1989_v2  ;;  %v1883_v11 = vpack.c.bf16 %v48_v10, %v47_v9  ;;  %v50_v13 = vld [vmem:[%s2692_s2 + $0x38] sm:$0xff]  ;;  %v2089_v14 = vld [vmem:[%s2693_s3 + $0x10] sm:$0xff]   ;;  %v51_v16 = vld [vmem:[%s2692_s2 + $0x40] sm:$0xff] }
   0x5   :  { %1878 = vmatpush3.bf16.msra.mxu0 %v1875_v3  ;;  %v1887_v15 = vpack.c.bf16 %v50_v13, %v49_v12  ;;  %v52_v17 = vld [vmem:[%s2692_s2 + $0x48] sm:$0xff]  ;;  %v2102_v18 = vld [vmem:[%s2693_s3 + $0x18] sm:$0xff]   ;;  %v53_v20 = vld [vmem:[%s2692_s2 + $0x50] sm:$0xff] }
   0x6   :  { %1880 = vmatprep.subr.bf16.mxu0 %v1879_v7  ;;  %v1891_v19 = vpack.c.bf16 %v52_v17, %v51_v16  ;;  %v35_v21 = vld [vmem:[%s2694_s0] sm:$0xff]  ;;  %v54_v22 = vld [vmem:[%s2692_s2 + $0x58] sm:$0xff]  ;;  %v56_v26 = vld [vmem:[%s2692_s2 + $0x68] sm:$0xff] }
   0x7   :  { %1514 = vmatpush3.bf16.msra.mxu1 %v2070_v8  ;;  %1499 = vmatprep.mubr.f32.mxu0 %v35_v21  ;;  %v2118_v23 = vld [vmem:[%s2693_s3 + $0x20] sm:$0xff]   ;;  %v1895_v24 = vpack.c.bf16 %v54_v22, %v53_v20  ;;  %v2131_v27 = vld [vmem:[%s2693_s3 + $0x28] sm:$0xff]   ;;  %v57_v29 = vld [vmem:[%s2692_s2 + $0x70] sm:$0xff] }
   0x8   :  { %1515 = vmatprep.subr.bf16.mxu1 %v1989_v2  ;;  %v55_v25 = vld [vmem:[%s2692_s2 + $0x60] sm:$0xff]  ;;  %v58_v30 = vld [vmem:[%s2692_s2 + $0x78] sm:$0xff]  ;;  %v2144_v31 = vld [vmem:[%s2693_s3 + $0x30] sm:$0xff]  }
   0x9   :  { %1882 = vmatpush3.bf16.msra.mxu0 %v1879_v7  ;;  %v1899_v28 = vpack.c.bf16 %v56_v26, %v55_v25  ;;  %v1903_v32 = vpack.c.bf16 %v58_v30, %v57_v29  ;;  %v2151_v33 = vld [vmem:[%s2693_s3 + $0x38] sm:$0xff]   ;;  %v212_v34 = vld [vmem:[%s2696_s1] sm:$0xff]  ;;  %v36_v36 = vld [vmem:[%s2694_s0 + $0x8] sm:$0xff] }
   0xa   :  { %1884 = vmatprep.subr.bf16.mxu0 %v1883_v11  ;;  %v213_v35 = vpack.c.bf16 %v212_v34, %v212_v34  ;;  %v2164_v37 = vld [vmem:[%s2695_s5] sm:$0xff]   ;;  %v37_v38 = vld [vmem:[%s2694_s0 + $0x10] sm:$0xff]  ;;  %v2176_v39 = vld [vmem:[%s2695_s5 + $0x8] sm:$0xff]  }
   0xb   :  { %1516 = vmatpush3.bf16.msra.mxu1 %v2089_v14  ;;  %v38_v40 = vld [vmem:[%s2694_s0 + $0x18] sm:$0xff]  ;;  %v2190_v41 = vld [vmem:[%s2695_s5 + $0x10] sm:$0xff]   ;;  %v2208_v43 = vld [vmem:[%s2695_s5 + $0x20] sm:$0xff]  }
   0xc   :  { %1517 = vmatprep.subr.bf16.mxu1 %v1989_v2  ;;  %v2199_v42 = vld [vmem:[%s2695_s5 + $0x18] sm:$0xff]   ;;  %v2217_v44 = vld [vmem:[%s2695_s5 + $0x28] sm:$0xff]   ;;  %v39_v45 = vld [vmem:[%s2694_s0 + $0x20] sm:$0xff] }
   0xd   :  { %1886 = vmatpush3.bf16.msra.mxu0 %v1883_v11  ;;  %v40_v46 = vld [vmem:[%s2694_s0 + $0x28] sm:$0xff]  ;;  %v2238_v47 = vld [vmem:[%s2695_s5 + $0x30] sm:$0xff]   ;;  %v42_v49 = vld [vmem:[%s2694_s0 + $0x38] sm:$0xff] }
   0xe   :  { %1888 = vmatprep.subr.bf16.mxu0 %v1887_v15  ;;  %v41_v48 = vld [vmem:[%s2694_s0 + $0x30] sm:$0xff]  ;;  %v2251_v50 = vld [vmem:[%s2695_s5 + $0x38] sm:$0xff]   ;;  %v2260_v51 = vld [vmem:[%s2697_s4] ss:$0 sm:$0xff] }
   0xf   :  { %1518 = vmatpush3.bf16.msra.mxu1 %v2102_v18  ;;  %v2296_v6 = vld [vmem:[%s2698_s6] ss:$0 sm:$0xff] }
  0x10   :  { %1519 = vmatprep.subr.bf16.mxu1 %v1989_v2 }
  0x11   :  { %1890 = vmatpush3.bf16.msra.mxu0 %v1887_v15 }
  0x12   :  { %1892 = vmatprep.subr.bf16.mxu0 %v1891_v19 }
  0x13   :  { %1520 = vmatpush3.bf16.msra.mxu1 %v2118_v23 }
  0x14   :  { %1521 = vmatprep.subr.bf16.mxu1 %v1989_v2 }
  0x15   :  { %1894 = vmatpush3.bf16.msra.mxu0 %v1891_v19 }
  0x16   :  { %1896 = vmatprep.subr.bf16.mxu0 %v1895_v24 }
  0x17   :  { %1522 = vmatpush3.bf16.msra.mxu1 %v2131_v27 }
  0x18   :  { %1523 = vmatprep.subr.bf16.mxu1 %v1989_v2 }
  0x19   :  { %1898 = vmatpush3.bf16.msra.mxu0 %v1895_v24 }
  0x1a   :  { %1900 = vmatprep.subr.bf16.mxu0 %v1899_v28 }
  0x1b   :  { %1524 = vmatpush3.bf16.msra.mxu1 %v2144_v31 }
  0x1c   :  { %1525 = vmatprep.subr.bf16.mxu1 %v1989_v2 }
  0x1d   :  { %1902 = vmatpush3.bf16.msra.mxu0 %v1899_v28 }
  0x1e   :  { %1904 = vmatprep.subr.bf16.mxu0 %v1903_v32 }
  0x1f   :  { %1526 = vmatpush3.bf16.msra.mxu1 %v2151_v33 }
  0x20   :  { %1551 = vmatprep.subr.bf16.mxu1 %v1989_v2 }
  0x21   :  { %1906 = vmatpush3.bf16.msra.mxu0 %v1903_v32 }
  0x22   :  { %1531 = vmatprep.subr.bf16.mxu0 %v1989_v2  ;;  %1528 = vmatmul.mubr.bf16.vlgmr.msra.gmra.mrb[0].mxu1 %v213_v35 }
  0x23   :  { %1552 = vmatpush3.bf16.msra.mxu1 %v2058_v4  ;;  %1567 = vmatprep.mubr.msk.bf16.mxu1 %vm1990_vm0, %v1989_v2 }
  0x24   :  { %1500 = vmatmul.mubr.f32.vlgmr.msra.gmra.mrb[0].mxu0 %v36_v36  ;;  %1553 = vmatprep.subr.bf16.mxu1 %v1989_v2 }
  0x25   :  { %1532 = vmatpush3.bf16.msra.mxu0 %v2164_v37  ;;  %1502 = vmatprep.mubr.f32.mxu0 %v37_v38 }
  0x26   :  { %1533 = vmatprep.subr.bf16.mxu0 %v1989_v2 }
  0x27   :  { %1554 = vmatpush3.bf16.msra.mxu1 %v2070_v8 }
  0x28   :  { %1503 = vmatmul.mubr.f32.gmra.mrb[2].mxu0 %v38_v40  ;;  %1555 = vmatprep.subr.bf16.mxu1 %v1989_v2 }
  0x29   :  { %1534 = vmatpush3.bf16.msra.mxu0 %v2176_v39  ;;  %1505 = vmatprep.mubr.f32.mxu0 %v39_v45 }
  0x2a   :  { %1535 = vmatprep.subr.bf16.mxu0 %v1989_v2 }
  0x2b   :  { %1556 = vmatpush3.bf16.msra.mxu1 %v2089_v14 }
  0x2c   :  { %1557 = vmatprep.subr.bf16.mxu1 %v1989_v2  ;;  %1506 = vmatmul.mubr.f32.gmra.mrb[4].mxu0 %v40_v46 }
  0x2d   :  { %1536 = vmatpush3.bf16.msra.mxu0 %v2190_v41  ;;  %1508 = vmatprep.mubr.f32.mxu0 %v41_v48 }
  0x2e   :  { %1537 = vmatprep.subr.bf16.mxu0 %v1989_v2 }
  0x2f   :  { %1558 = vmatpush3.bf16.msra.mxu1 %v2102_v18 }
  0x30   :  { %1559 = vmatprep.subr.bf16.mxu1 %v1989_v2  ;;  %1509 = vmatmul.mubr.f32.gmra.mrb[6].mxu0 %v42_v49 }
  0x31   :  { %1538 = vmatpush3.bf16.msra.mxu0 %v2199_v42  ;;  %1547 = vmatprep.mubr.msk.bf16.mxu0 %vm1990_vm0, %v1989_v2 }
  0x32   :  { %1539 = vmatprep.subr.bf16.mxu0 %v1989_v2 }
  0x33   :  { %1560 = vmatpush3.bf16.msra.mxu1 %v2118_v23 }
  0x34   :  { %1561 = vmatprep.subr.bf16.mxu1 %v1989_v2 }
  0x35   :  { %1540 = vmatpush3.bf16.msra.mxu0 %v2208_v43 }
  0x36   :  { %1541 = vmatprep.subr.bf16.mxu0 %v1989_v2 }
  0x37   :  { %1562 = vmatpush3.bf16.msra.mxu1 %v2131_v27 }
  0x38   :  { %1563 = vmatprep.subr.bf16.mxu1 %v1989_v2 }
  0x39   :  { %1542 = vmatpush3.bf16.msra.mxu0 %v2217_v44 }
  0x3a   :  { %1543 = vmatprep.subr.bf16.mxu0 %v1989_v2 }
  0x3b   :  { %1564 = vmatpush3.bf16.msra.mxu1 %v2144_v31 }
  0x3c   :  { %1565 = vmatprep.subr.bf16.mxu1 %v1989_v2 }
  0x3d   :  { %1544 = vmatpush3.bf16.msra.mxu0 %v2238_v47 }
  0x3e   :  { %1545 = vmatprep.subr.bf16.mxu0 %v1989_v2 }
  0x3f   :  { %1566 = vmatpush3.bf16.msra.mxu1 %v2151_v33 }
  0x40   :  { %1591 = vmatprep.subr.bf16.mxu1 %v1989_v2 }
  0x41   :  { %1546 = vmatpush3.bf16.msra.mxu0 %v2251_v50 }
  0x42   :  { %1571 = vmatprep.subr.bf16.mxu0 %v1989_v2 }
  0xf5   :  { %v297_v52 = vpop.f32.mrb[0].mxu1 }
  0xf6   :  { %v1529_v54 = vpop.f32.mrb[1].mxu1 }
  0xf7   :  { %v1501_v53 = vpop.f32.mrb[0].mxu0  ;;  %v300_v56 = vpop.f32.mrb[2].mxu1 }
  0xf8   :  { %v132_v55 = vpop.f32.mrb[1].mxu0  ;;  %v1530_v58 = vpop.f32.mrb[3].mxu1  ;;  %v138_v16 = vadd.f32 %v1501_v53, %v2260_v51 }
  0xf9   :  { %v133_v57 = vadd.f32 %v2260_v51, %v132_v55 }
  0xfb   :  { %v298_v59 = vadd.f32 %v297_v52, %v133_v57  ;;  %v2263_v60 = vpop.f32.mrb[2].mxu0 }
  0xfc   :  { %v2265_v61 = vpop.f32.mrb[3].mxu0 }
  0xfd   :  { %v303_v62 = vmax.f32 %v298_v59, 0.0  ;;  %v143_v36 = vadd.f32 %v2260_v51, %v2265_v61  ;;  %v148_v61 = vadd.f32 %v2263_v60, %v2260_v51 }
  0xff   :  { %v304_v63 = vpack.c.bf16 %v303_v62, %v303_v62  ;;  %v2285_v0 = vpop.f32.mrb[4].mxu0 }
 0x100   :  { %v2287_v1 = vpop.f32.mrb[5].mxu0 }
 0x101   :  { %1548 = vmatmul.mubr.bf16.vlgmr.msra.gmra.mrb[8].mxu0 %v304_v63 }
 0x102   :  { %1572 = vmatpush3.bf16.msra.mxu0 %v2164_v37  ;;  %1587 = vmatprep.mubr.msk.bf16.mxu0 %vm1990_vm0, %v1989_v2 }
 0x103   :  { %1573 = vmatprep.subr.bf16.mxu0 %v1989_v2  ;;  %v2289_v3 = vpop.f32.mrb[6].mxu0 }
 0x104   :  { %v2291_v5 = vpop.f32.mrb[7].mxu0 }
 0x106   :  { %1574 = vmatpush3.bf16.msra.mxu0 %v2176_v39 }
 0x107   :  { %1575 = vmatprep.subr.bf16.mxu0 %v1989_v2 }
 0x10a   :  { %1576 = vmatpush3.bf16.msra.mxu0 %v2190_v41 }
 0x10b   :  { %1577 = vmatprep.subr.bf16.mxu0 %v1989_v2 }
 0x10e   :  { %1578 = vmatpush3.bf16.msra.mxu0 %v2199_v42 }
 0x10f   :  { %1579 = vmatprep.subr.bf16.mxu0 %v1989_v2 }
 0x112   :  { %1580 = vmatpush3.bf16.msra.mxu0 %v2208_v43 }
 0x113   :  { %1581 = vmatprep.subr.bf16.mxu0 %v1989_v2 }
 0x116   :  { %1582 = vmatpush3.bf16.msra.mxu0 %v2217_v44 }
 0x117   :  { %1583 = vmatprep.subr.bf16.mxu0 %v1989_v2 }
 0x11a   :  { %1584 = vmatpush3.bf16.msra.mxu0 %v2238_v47 }
 0x11b   :  { %1585 = vmatprep.subr.bf16.mxu0 %v1989_v2 }
 0x11e   :  { %1586 = vmatpush3.bf16.msra.mxu0 %v2251_v50 }
 0x11f   :  { %1611 = vmatprep.subr.bf16.mxu0 %v1989_v2 }
 0x1d4   :  { %v393_v7 = vpop.f32.mrb[8].mxu0 }
 0x1d5   :  { %v394_v9 = vadd.f32 %v2296_v6, %v393_v7  ;;  %v1549_v10 = vpop.f32.mrb[9].mxu0 }
 0x1d6   :  { %v396_v11 = vpop.f32.mrb[10].mxu0 }
 0x1d7   :  { %v2299_v12 = vmax.f32 %v394_v9, 0.0  ;;  %v1550_v13 = vpop.f32.mrb[11].mxu0 }
 0x1d9   :  { %400 = vst [vmem:[%s2699_s10] sm:$0xff] %v2299_v12  ;;  %v401_v15 = vpack.c.bf16 %v2299_v12, %v2299_v12 }
 0x1db   :  { %1568 = vmatmul.mubr.bf16.vlgmr.msra.gmra.mrb[4].mxu1 %v401_v15 }
 0x1dc   :  { %1592 = vmatpush3.bf16.msra.mxu1 %v2058_v4  ;;  %1607 = vmatprep.mubr.msk.bf16.mxu1 %vm1990_vm0, %v1989_v2 }
 0x1dd   :  { %1593 = vmatprep.subr.bf16.mxu1 %v1989_v2 }
 0x1e0   :  { %1594 = vmatpush3.bf16.msra.mxu1 %v2070_v8 }
 0x1e1   :  { %1595 = vmatprep.subr.bf16.mxu1 %v1989_v2 }
 0x1e4   :  { %1596 = vmatpush3.bf16.msra.mxu1 %v2089_v14 }
 0x1e5   :  { %1597 = vmatprep.subr.bf16.mxu1 %v1989_v2 }
 0x1e8   :  { %1598 = vmatpush3.bf16.msra.mxu1 %v2102_v18 }
 0x1e9   :  { %1599 = vmatprep.subr.bf16.mxu1 %v1989_v2 }
 0x1ec   :  { %1600 = vmatpush3.bf16.msra.mxu1 %v2118_v23 }
 0x1ed   :  { %1601 = vmatprep.subr.bf16.mxu1 %v1989_v2 }
 0x1f0   :  { %1602 = vmatpush3.bf16.msra.mxu1 %v2131_v27 }
 0x1f1   :  { %1603 = vmatprep.subr.bf16.mxu1 %v1989_v2 }
 0x1f4   :  { %1604 = vmatpush3.bf16.msra.mxu1 %v2144_v31 }
 0x1f5   :  { %1605 = vmatprep.subr.bf16.mxu1 %v1989_v2 }
 0x1f8   :  { %1606 = vmatpush3.bf16.msra.mxu1 %v2151_v33 }
 0x1f9   :  { %1631 = vmatprep.subr.bf16.mxu1 %v1989_v2 }
 0x2ae   :  { %v438_v17 = vpop.f32.mrb[4].mxu1 }
 0x2af   :  { %v439_v19 = vadd.f32 %v438_v17, %v138_v16  ;;  %v1569_v20 = vpop.f32.mrb[5].mxu1 }
 0x2b0   :  { %v441_v21 = vpop.f32.mrb[6].mxu1 }
 0x2b1   :  { %v444_v22 = vmax.f32 %v439_v19, 0.0  ;;  %v1570_v24 = vpop.f32.mrb[7].mxu1 }
 0x2b3   :  { %v445_v25 = vpack.c.bf16 %v444_v22, %v444_v22  ;;  %v153_v22 = vadd.f32 %v2260_v51, %v2287_v1 }
 0x2b5   :  { %1588 = vmatmul.mubr.bf16.vlgmr.msra.gmra.mrb[12].mxu0 %v445_v25 }
 0x2b6   :  { %1612 = vmatpush3.bf16.msra.mxu0 %v2164_v37  ;;  %1627 = vmatprep.mubr.msk.bf16.mxu0 %vm1990_vm0, %v1989_v2 }
 0x2b7   :  { %1613 = vmatprep.subr.bf16.mxu0 %v1989_v2 }
 0x2ba   :  { %1614 = vmatpush3.bf16.msra.mxu0 %v2176_v39 }
 0x2bb   :  { %1615 = vmatprep.subr.bf16.mxu0 %v1989_v2 }
 0x2be   :  { %1616 = vmatpush3.bf16.msra.mxu0 %v2190_v41 }
 0x2bf   :  { %1617 = vmatprep.subr.bf16.mxu0 %v1989_v2 }
 0x2c2   :  { %1618 = vmatpush3.bf16.msra.mxu0 %v2199_v42 }
 0x2c3   :  { %1619 = vmatprep.subr.bf16.mxu0 %v1989_v2 }
 0x2c6   :  { %1620 = vmatpush3.bf16.msra.mxu0 %v2208_v43 }
 0x2c7   :  { %1621 = vmatprep.subr.bf16.mxu0 %v1989_v2 }
 0x2ca   :  { %1622 = vmatpush3.bf16.msra.mxu0 %v2217_v44 }
 0x2cb   :  { %1623 = vmatprep.subr.bf16.mxu0 %v1989_v2 }
 0x2ce   :  { %1624 = vmatpush3.bf16.msra.mxu0 %v2238_v47 }
 0x2cf   :  { %1625 = vmatprep.subr.bf16.mxu0 %v1989_v2 }
 0x2d2   :  { %1626 = vmatpush3.bf16.msra.mxu0 %v2251_v50 }
 0x2d3   :  { %1651 = vmatprep.subr.bf16.mxu0 %v1989_v2 }
 0x388   :  { %v480_v26 = vpop.f32.mrb[12].mxu0 }
 0x389   :  { %v481_v28 = vadd.f32 %v2296_v6, %v480_v26  ;;  %v1589_v29 = vpop.f32.mrb[13].mxu0 }
 0x38a   :  { %v483_v30 = vpop.f32.mrb[14].mxu0 }
 0x38b   :  { %v2345_v32 = vmax.f32 %v481_v28, 0.0  ;;  %v1590_v34 = vpop.f32.mrb[15].mxu0 }
 0x38d   :  { %1267 = vst [vmem:[%s2699_s10 + $0x8] sm:$0xff] %v2345_v32  ;;  %v489_v35 = vpack.c.bf16 %v2345_v32, %v2345_v32 }
 0x38f   :  { %1608 = vmatmul.mubr.bf16.vlgmr.msra.gmra.mrb[8].mxu1 %v489_v35 }
 0x390   :  { %1632 = vmatpush3.bf16.msra.mxu1 %v2058_v4  ;;  %1647 = vmatprep.mubr.msk.bf16.mxu1 %vm1990_vm0, %v1989_v2 }
 0x391   :  { %1633 = vmatprep.subr.bf16.mxu1 %v1989_v2 }
 0x394   :  { %1634 = vmatpush3.bf16.msra.mxu1 %v2070_v8 }
 0x395   :  { %1635 = vmatprep.subr.bf16.mxu1 %v1989_v2 }
 0x398   :  { %1636 = vmatpush3.bf16.msra.mxu1 %v2089_v14 }
 0x399   :  { %1637 = vmatprep.subr.bf16.mxu1 %v1989_v2 }
 0x39c   :  { %1638 = vmatpush3.bf16.msra.mxu1 %v2102_v18 }
 0x39d   :  { %1639 = vmatprep.subr.bf16.mxu1 %v1989_v2 }
 0x3a0   :  { %1640 = vmatpush3.bf16.msra.mxu1 %v2118_v23 }
 0x3a1   :  { %1641 = vmatprep.subr.bf16.mxu1 %v1989_v2 }
 0x3a4   :  { %1642 = vmatpush3.bf16.msra.mxu1 %v2131_v27 }
 0x3a5   :  { %1643 = vmatprep.subr.bf16.mxu1 %v1989_v2 }
 0x3a8   :  { %1644 = vmatpush3.bf16.msra.mxu1 %v2144_v31 }
 0x3a9   :  { %1645 = vmatprep.subr.bf16.mxu1 %v1989_v2 }
 0x3ac   :  { %1646 = vmatpush3.bf16.msra.mxu1 %v2151_v33 }
 0x3ad   :  { %1671 = vmatprep.subr.bf16.mxu1 %v1989_v2 }
 0x462   :  { %v526_v38 = vpop.f32.mrb[8].mxu1 }
 0x463   :  { %v527_v40 = vadd.f32 %v526_v38, %v143_v36  ;;  %v1609_v45 = vpop.f32.mrb[9].mxu1 }
 0x464   :  { %v529_v46 = vpop.f32.mrb[10].mxu1 }
 0x465   :  { %v532_v48 = vmax.f32 %v527_v40, 0.0  ;;  %v1610_v49 = vpop.f32.mrb[11].mxu1 }
 0x467   :  { %v533_v52 = vpack.c.bf16 %v532_v48, %v532_v48  ;;  %v158_v48 = vadd.f32 %v2285_v0, %v2260_v51 }
 0x469   :  { %1628 = vmatmul.mubr.bf16.vlgmr.msra.gmra.mrb[16].mxu0 %v533_v52 }
 0x46a   :  { %1652 = vmatpush3.bf16.msra.mxu0 %v2164_v37  ;;  %1667 = vmatprep.mubr.msk.bf16.mxu0 %vm1990_vm0, %v1989_v2 }
 0x46b   :  { %1653 = vmatprep.subr.bf16.mxu0 %v1989_v2 }
 0x46e   :  { %1654 = vmatpush3.bf16.msra.mxu0 %v2176_v39 }
 0x46f   :  { %1655 = vmatprep.subr.bf16.mxu0 %v1989_v2 }
 0x472   :  { %1656 = vmatpush3.bf16.msra.mxu0 %v2190_v41 }
 0x473   :  { %1657 = vmatprep.subr.bf16.mxu0 %v1989_v2 }
 0x476   :  { %1658 = vmatpush3.bf16.msra.mxu0 %v2199_v42 }
 0x477   :  { %1659 = vmatprep.subr.bf16.mxu0 %v1989_v2 }
 0x47a   :  { %1660 = vmatpush3.bf16.msra.mxu0 %v2208_v43 }
 0x47b   :  { %1661 = vmatprep.subr.bf16.mxu0 %v1989_v2 }
 0x47e   :  { %1662 = vmatpush3.bf16.msra.mxu0 %v2217_v44 }
 0x47f   :  { %1663 = vmatprep.subr.bf16.mxu0 %v1989_v2 }
 0x482   :  { %1664 = vmatpush3.bf16.msra.mxu0 %v2238_v47 }
 0x483   :  { %1665 = vmatprep.subr.bf16.mxu0 %v1989_v2 }
 0x486   :  { %1666 = vmatpush3.bf16.msra.mxu0 %v2251_v50 }
 0x487   :  { %1691 = vmatprep.subr.bf16.mxu0 %v1989_v2 }
 0x53c   :  { %v568_v53 = vpop.f32.mrb[16].mxu0 }
 0x53d   :  { %v569_v54 = vadd.f32 %v2296_v6, %v568_v53  ;;  %v1629_v55 = vpop.f32.mrb[17].mxu0 }
 0x53e   :  { %v571_v56 = vpop.f32.mrb[18].mxu0 }
 0x53f   :  { %v2392_v57 = vmax.f32 %v569_v54, 0.0  ;;  %v1630_v58 = vpop.f32.mrb[19].mxu0 }
 0x541   :  { %1268 = vst [vmem:[%s2699_s10 + $0x10] sm:$0xff] %v2392_v57  ;;  %v577_v59 = vpack.c.bf16 %v2392_v57, %v2392_v57 }
 0x543   :  { %1648 = vmatmul.mubr.bf16.vlgmr.msra.gmra.mrb[12].mxu1 %v577_v59 }
 0x544   :  { %1672 = vmatpush3.bf16.msra.mxu1 %v2058_v4  ;;  %1687 = vmatprep.mubr.msk.bf16.mxu1 %vm1990_vm0, %v1989_v2 }
 0x545   :  { %1673 = vmatprep.subr.bf16.mxu1 %v1989_v2 }
 0x548   :  { %1674 = vmatpush3.bf16.msra.mxu1 %v2070_v8 }
 0x549   :  { %1675 = vmatprep.subr.bf16.mxu1 %v1989_v2 }
 0x54c   :  { %1676 = vmatpush3.bf16.msra.mxu1 %v2089_v14 }
 0x54d   :  { %1677 = vmatprep.subr.bf16.mxu1 %v1989_v2 }
 0x550   :  { %1678 = vmatpush3.bf16.msra.mxu1 %v2102_v18 }
 0x551   :  { %1679 = vmatprep.subr.bf16.mxu1 %v1989_v2 }
 0x554   :  { %1680 = vmatpush3.bf16.msra.mxu1 %v2118_v23 }
 0x555   :  { %1681 = vmatprep.subr.bf16.mxu1 %v1989_v2 }
 0x558   :  { %1682 = vmatpush3.bf16.msra.mxu1 %v2131_v27 }
 0x559   :  { %1683 = vmatprep.subr.bf16.mxu1 %v1989_v2 }
 0x55c   :  { %1684 = vmatpush3.bf16.msra.mxu1 %v2144_v31 }
 0x55d   :  { %1685 = vmatprep.subr.bf16.mxu1 %v1989_v2 }
 0x560   :  { %1686 = vmatpush3.bf16.msra.mxu1 %v2151_v33 }
 0x561   :  { %1711 = vmatprep.subr.bf16.mxu1 %v1989_v2 }
 0x616   :  { %v614_v62 = vpop.f32.mrb[12].mxu1 }
 0x617   :  { %v615_v63 = vadd.f32 %v614_v62, %v148_v61  ;;  %v1649_v7 = vpop.f32.mrb[13].mxu1 }
 0x618   :  { %v617_v9 = vpop.f32.mrb[14].mxu1 }
 0x619   :  { %v620_v10 = vmax.f32 %v615_v63, 0.0  ;;  %v1650_v11 = vpop.f32.mrb[15].mxu1 }
 0x61b   :  { %v621_v13 = vpack.c.bf16 %v620_v10, %v620_v10 }
 0x61d   :  { %1668 = vmatmul.mubr.bf16.vlgmr.msra.gmra.mrb[20].mxu0 %v621_v13 }
 0x61e   :  { %1692 = vmatpush3.bf16.msra.mxu0 %v2164_v37  ;;  %1707 = vmatprep.mubr.msk.bf16.mxu0 %vm1990_vm0, %v1989_v2 }
 0x61f   :  { %1693 = vmatprep.subr.bf16.mxu0 %v1989_v2 }
 0x622   :  { %1694 = vmatpush3.bf16.msra.mxu0 %v2176_v39 }
 0x623   :  { %1695 = vmatprep.subr.bf16.mxu0 %v1989_v2 }
 0x626   :  { %1696 = vmatpush3.bf16.msra.mxu0 %v2190_v41 }
 0x627   :  { %1697 = vmatprep.subr.bf16.mxu0 %v1989_v2 }
 0x62a   :  { %1698 = vmatpush3.bf16.msra.mxu0 %v2199_v42 }
 0x62b   :  { %1699 = vmatprep.subr.bf16.mxu0 %v1989_v2 }
 0x62e   :  { %1700 = vmatpush3.bf16.msra.mxu0 %v2208_v43 }
 0x62f   :  { %1701 = vmatprep.subr.bf16.mxu0 %v1989_v2 }
 0x632   :  { %1702 = vmatpush3.bf16.msra.mxu0 %v2217_v44 }
 0x633   :  { %1703 = vmatprep.subr.bf16.mxu0 %v1989_v2 }
 0x636   :  { %1704 = vmatpush3.bf16.msra.mxu0 %v2238_v47 }
 0x637   :  { %1705 = vmatprep.subr.bf16.mxu0 %v1989_v2 }
 0x63a   :  { %1706 = vmatpush3.bf16.msra.mxu0 %v2251_v50 }
 0x63b   :  { %1731 = vmatprep.subr.bf16.mxu0 %v1989_v2 }
 0x6f0   :  { %v656_v60 = vpop.f32.mrb[20].mxu0 }
 0x6f1   :  { %v657_v15 = vadd.f32 %v2296_v6, %v656_v60  ;;  %v1669_v16 = vpop.f32.mrb[21].mxu0  ;;  %v1029_v60 = vld [vmem:[%s2700_s7 + $0x20] sm:$0xff] }
 0x6f2   :  { %v659_v17 = vpop.f32.mrb[22].mxu0 }
 0x6f3   :  { %v2439_v19 = vmax.f32 %v657_v15, 0.0  ;;  %v1670_v20 = vpop.f32.mrb[23].mxu0  ;;  %v1030_v15 = vld [vmem:[%s2700_s7 + $0x28] sm:$0xff]  ;;  %v1031_v17 = vld [vmem:[%s2700_s7 + $0x30] sm:$0xff] }
 0x6f4   :  { %v1915_v16 = vpack.c.bf16 %v1030_v15, %v1029_v60  ;;  %v1032_v20 = vld [vmem:[%s2700_s7 + $0x38] sm:$0xff] }
 0x6f5   :  { %1269 = vst [vmem:[%s2699_s10 + $0x18] sm:$0xff] %v2439_v19  ;;  %v665_v21 = vpack.c.bf16 %v2439_v19, %v2439_v19 }
 0x6f7   :  { %1688 = vmatmul.mubr.bf16.vlgmr.msra.gmra.mrb[16].mxu1 %v665_v21  ;;  %v1919_v21 = vpack.c.bf16 %v1032_v20, %v1031_v17 }
 0x6f8   :  { %1712 = vmatpush3.bf16.msra.mxu1 %v2058_v4  ;;  %1727 = vmatprep.mubr.msk.bf16.mxu1 %vm1990_vm0, %v1989_v2 }
 0x6f9   :  { %1713 = vmatprep.subr.bf16.mxu1 %v1989_v2 }
 0x6fc   :  { %1714 = vmatpush3.bf16.msra.mxu1 %v2070_v8 }
 0x6fd   :  { %1715 = vmatprep.subr.bf16.mxu1 %v1989_v2 }
 0x700   :  { %1716 = vmatpush3.bf16.msra.mxu1 %v2089_v14 }
 0x701   :  { %1717 = vmatprep.subr.bf16.mxu1 %v1989_v2 }
 0x704   :  { %1718 = vmatpush3.bf16.msra.mxu1 %v2102_v18 }
 0x705   :  { %1719 = vmatprep.subr.bf16.mxu1 %v1989_v2 }
 0x708   :  { %1720 = vmatpush3.bf16.msra.mxu1 %v2118_v23 }
 0x709   :  { %1721 = vmatprep.subr.bf16.mxu1 %v1989_v2 }
 0x70c   :  { %1722 = vmatpush3.bf16.msra.mxu1 %v2131_v27 }
 0x70d   :  { %1723 = vmatprep.subr.bf16.mxu1 %v1989_v2 }
 0x710   :  { %1724 = vmatpush3.bf16.msra.mxu1 %v2144_v31 }
 0x711   :  { %1725 = vmatprep.subr.bf16.mxu1 %v1989_v2 }
 0x714   :  { %1726 = vmatpush3.bf16.msra.mxu1 %v2151_v33 }
 0x715   :  { %1751 = vmatprep.subr.bf16.mxu1 %v1989_v2 }
 0x7ca   :  { %v702_v24 = vpop.f32.mrb[16].mxu1 }
 0x7cb   :  { %v703_v25 = vadd.f32 %v702_v24, %v153_v22  ;;  %v1689_v26 = vpop.f32.mrb[17].mxu1  ;;  %v1033_v22 = vld [vmem:[%s2700_s7 + $0x40] sm:$0xff] }
 0x7cc   :  { %v705_v28 = vpop.f32.mrb[18].mxu1  ;;  %v1036_v26 = vld [vmem:[%s2700_s7 + $0x58] sm:$0xff] }
 0x7cd   :  { %v708_v29 = vmax.f32 %v703_v25, 0.0  ;;  %v1690_v30 = vpop.f32.mrb[19].mxu1  ;;  %v1035_v25 = vld [vmem:[%s2700_s7 + $0x50] sm:$0xff] }
 0x7ce   :  { %v1927_v28 = vpack.c.bf16 %v1036_v26, %v1035_v25  ;;  %v1038_v30 = vld [vmem:[%s2700_s7 + $0x68] sm:$0xff] }
 0x7cf   :  { %v709_v34 = vpack.c.bf16 %v708_v29, %v708_v29  ;;  %v1037_v29 = vld [vmem:[%s2700_s7 + $0x60] sm:$0xff] }
 0x7d1   :  { %1708 = vmatmul.mubr.bf16.vlgmr.msra.gmra.mrb[24].mxu0 %v709_v34  ;;  %v1931_v34 = vpack.c.bf16 %v1038_v30, %v1037_v29 }
 0x7d2   :  { %1732 = vmatpush3.bf16.msra.mxu0 %v2164_v37  ;;  %1747 = vmatprep.mubr.msk.bf16.mxu0 %vm1990_vm0, %v1989_v2 }
 0x7d3   :  { %1733 = vmatprep.subr.bf16.mxu0 %v1989_v2 }
 0x7d6   :  { %1734 = vmatpush3.bf16.msra.mxu0 %v2176_v39 }
 0x7d7   :  { %1735 = vmatprep.subr.bf16.mxu0 %v1989_v2 }
 0x7da   :  { %1736 = vmatpush3.bf16.msra.mxu0 %v2190_v41 }
 0x7db   :  { %1737 = vmatprep.subr.bf16.mxu0 %v1989_v2 }
 0x7de   :  { %1738 = vmatpush3.bf16.msra.mxu0 %v2199_v42 }
 0x7df   :  { %1739 = vmatprep.subr.bf16.mxu0 %v1989_v2 }
 0x7e2   :  { %1740 = vmatpush3.bf16.msra.mxu0 %v2208_v43 }
 0x7e3   :  { %1741 = vmatprep.subr.bf16.mxu0 %v1989_v2 }
 0x7e6   :  { %1742 = vmatpush3.bf16.msra.mxu0 %v2217_v44 }
 0x7e7   :  { %1743 = vmatprep.subr.bf16.mxu0 %v1989_v2 }
 0x7ea   :  { %1744 = vmatpush3.bf16.msra.mxu0 %v2238_v47 }
 0x7eb   :  { %1745 = vmatprep.subr.bf16.mxu0 %v1989_v2 }
 0x7ee   :  { %1746 = vmatpush3.bf16.msra.mxu0 %v2251_v50 }
 0x7ef   :  { %1771 = vmatprep.subr.bf16.mxu0 %v1989_v2 }
 0x8a4   :  { %v744_v1 = vpop.f32.mrb[24].mxu0 }
 0x8a5   :  { %v745_v35 = vadd.f32 %v2296_v6, %v744_v1  ;;  %v1709_v36 = vpop.f32.mrb[25].mxu0  ;;  %v1039_v1 = vld [vmem:[%s2700_s7 + $0x70] sm:$0xff] }
 0x8a6   :  { %v747_v38 = vpop.f32.mrb[26].mxu0 }
 0x8a7   :  { %v2486_v40 = vmax.f32 %v745_v35, 0.0  ;;  %v1710_v45 = vpop.f32.mrb[27].mxu0  ;;  %v1040_v35 = vld [vmem:[%s2700_s7 + $0x78] sm:$0xff]  ;;  %v168_v38 = vadd.f32 %v2289_v3, %v2260_v51 }
 0x8a8   :  { %v1935_v36 = vpack.c.bf16 %v1040_v35, %v1039_v1 }
 0x8a9   :  { %1270 = vst [vmem:[%s2699_s10 + $0x20] sm:$0xff] %v2486_v40  ;;  %v753_v46 = vpack.c.bf16 %v2486_v40, %v2486_v40 }
 0x8ab   :  { %1728 = vmatmul.mubr.bf16.vlgmr.msra.gmra.mrb[20].mxu1 %v753_v46 }
 0x8ac   :  { %1752 = vmatpush3.bf16.msra.mxu1 %v2058_v4  ;;  %1767 = vmatprep.mubr.msk.bf16.mxu1 %vm1990_vm0, %v1989_v2 }
 0x8ad   :  { %1753 = vmatprep.subr.bf16.mxu1 %v1989_v2 }
 0x8b0   :  { %1754 = vmatpush3.bf16.msra.mxu1 %v2070_v8 }
 0x8b1   :  { %1755 = vmatprep.subr.bf16.mxu1 %v1989_v2 }
 0x8b4   :  { %1756 = vmatpush3.bf16.msra.mxu1 %v2089_v14 }
 0x8b5   :  { %1757 = vmatprep.subr.bf16.mxu1 %v1989_v2 }
 0x8b8   :  { %1758 = vmatpush3.bf16.msra.mxu1 %v2102_v18 }
 0x8b9   :  { %1759 = vmatprep.subr.bf16.mxu1 %v1989_v2 }
 0x8bc   :  { %1760 = vmatpush3.bf16.msra.mxu1 %v2118_v23 }
 0x8bd   :  { %1761 = vmatprep.subr.bf16.mxu1 %v1989_v2 }
 0x8c0   :  { %1762 = vmatpush3.bf16.msra.mxu1 %v2131_v27 }
 0x8c1   :  { %1763 = vmatprep.subr.bf16.mxu1 %v1989_v2 }
 0x8c4   :  { %1764 = vmatpush3.bf16.msra.mxu1 %v2144_v31 }
 0x8c5   :  { %1765 = vmatprep.subr.bf16.mxu1 %v1989_v2 }
 0x8c8   :  { %1766 = vmatpush3.bf16.msra.mxu1 %v2151_v33 }
 0x8c9   :  { %1791 = vmatprep.subr.bf16.mxu1 %v1989_v2 }
 0x97e   :  { %v790_v49 = vpop.f32.mrb[20].mxu1 }
 0x97f   :  { %v791_v52 = vadd.f32 %v790_v49, %v158_v48  ;;  %v1729_v53 = vpop.f32.mrb[21].mxu1 }
 0x980   :  { %v793_v54 = vpop.f32.mrb[22].mxu1 }
 0x981   :  { %v796_v55 = vmax.f32 %v791_v52, 0.0  ;;  %v1730_v56 = vpop.f32.mrb[23].mxu1 }
 0x983   :  { %v797_v58 = vpack.c.bf16 %v796_v55, %v796_v55 }
 0x985   :  { %1748 = vmatmul.mubr.bf16.vlgmr.msra.gmra.mrb[28].mxu0 %v797_v58 }
 0x986   :  { %1772 = vmatpush3.bf16.msra.mxu0 %v2164_v37  ;;  %1787 = vmatprep.mubr.msk.bf16.mxu0 %vm1990_vm0, %v1989_v2 }
 0x987   :  { %1773 = vmatprep.subr.bf16.mxu0 %v1989_v2 }
 0x98a   :  { %1774 = vmatpush3.bf16.msra.mxu0 %v2176_v39 }
 0x98b   :  { %1775 = vmatprep.subr.bf16.mxu0 %v1989_v2 }
 0x98e   :  { %1776 = vmatpush3.bf16.msra.mxu0 %v2190_v41 }
 0x98f   :  { %1777 = vmatprep.subr.bf16.mxu0 %v1989_v2 }
 0x992   :  { %1778 = vmatpush3.bf16.msra.mxu0 %v2199_v42 }
 0x993   :  { %1779 = vmatprep.subr.bf16.mxu0 %v1989_v2 }
 0x996   :  { %1780 = vmatpush3.bf16.msra.mxu0 %v2208_v43 }
 0x997   :  { %1781 = vmatprep.subr.bf16.mxu0 %v1989_v2 }
 0x99a   :  { %1782 = vmatpush3.bf16.msra.mxu0 %v2217_v44 }
 0x99b   :  { %1783 = vmatprep.subr.bf16.mxu0 %v1989_v2 }
 0x99e   :  { %1784 = vmatpush3.bf16.msra.mxu0 %v2238_v47 }
 0x99f   :  { %1785 = vmatprep.subr.bf16.mxu0 %v1989_v2 }
 0x9a2   :  { %1786 = vmatpush3.bf16.msra.mxu0 %v2251_v50 }
 0x9a3   :  { %1811 = vmatprep.subr.bf16.mxu0 %v1989_v2 }
 0xa58   :  { %v832_v0 = vpop.f32.mrb[28].mxu0 }
 0xa59   :  { %v833_v59 = vadd.f32 %v2296_v6, %v832_v0  ;;  %v1749_v61 = vpop.f32.mrb[29].mxu0 }
 0xa5a   :  { %v835_v62 = vpop.f32.mrb[30].mxu0 }
 0xa5b   :  { %v2533_v63 = vmax.f32 %v833_v59, 0.0  ;;  %v1750_v7 = vpop.f32.mrb[31].mxu0 }
 0xa5d   :  { %1271 = vst [vmem:[%s2699_s10 + $0x28] sm:$0xff] %v2533_v63  ;;  %v841_v9 = vpack.c.bf16 %v2533_v63, %v2533_v63 }
 0xa5f   :  { %1768 = vmatmul.mubr.bf16.vlgmr.msra.gmra.mrb[24].mxu1 %v841_v9 }
 0xa60   :  { %1792 = vmatpush3.bf16.msra.mxu1 %v2058_v4  ;;  %1807 = vmatprep.mubr.msk.bf16.mxu1 %vm1990_vm0, %v1989_v2  ;;  %v163_v4 = vadd.f32 %v2260_v51, %v2291_v5 }
 0xa61   :  { %1793 = vmatprep.subr.bf16.mxu1 %v1989_v2 }
 0xa64   :  { %1794 = vmatpush3.bf16.msra.mxu1 %v2070_v8 }
 0xa65   :  { %1795 = vmatprep.subr.bf16.mxu1 %v1989_v2 }
 0xa68   :  { %1796 = vmatpush3.bf16.msra.mxu1 %v2089_v14 }
 0xa69   :  { %1797 = vmatprep.subr.bf16.mxu1 %v1989_v2 }
 0xa6c   :  { %1798 = vmatpush3.bf16.msra.mxu1 %v2102_v18 }
 0xa6d   :  { %1799 = vmatprep.subr.bf16.mxu1 %v1989_v2 }
 0xa70   :  { %1800 = vmatpush3.bf16.msra.mxu1 %v2118_v23 }
 0xa71   :  { %1801 = vmatprep.subr.bf16.mxu1 %v1989_v2 }
 0xa74   :  { %1802 = vmatpush3.bf16.msra.mxu1 %v2131_v27  ;;  %v1025_v27 = vld [vmem:[%s2700_s7] sm:$0xff] }
 0xa75   :  { %1803 = vmatprep.subr.bf16.mxu1 %v1989_v2 }
 0xa78   :  { %1804 = vmatpush3.bf16.msra.mxu1 %v2144_v31  ;;  %v1026_v31 = vld [vmem:[%s2700_s7 + $0x8] sm:$0xff] }
 0xa79   :  { %1805 = vmatprep.subr.bf16.mxu1 %v1989_v2 }
 0xa7c   :  { %1806 = vmatpush3.bf16.msra.mxu1 %v2151_v33  ;;  %v1907_v33 = vpack.c.bf16 %v1026_v31, %v1025_v27 }
 0xa7e   :  { %1908 = vmatprep.subr.bf16.mxu1 %v1907_v33 }
 0xb32   :  { %v878_v8 = vpop.f32.mrb[24].mxu1 }
 0xb33   :  { %v879_v14 = vadd.f32 %v878_v8, %v163_v4  ;;  %v1769_v18 = vpop.f32.mrb[25].mxu1 }
 0xb34   :  { %v881_v10 = vpop.f32.mrb[26].mxu1 }
 0xb35   :  { %v884_v23 = vmax.f32 %v879_v14, 0.0  ;;  %v1770_v11 = vpop.f32.mrb[27].mxu1 }
 0xb37   :  { %v885_v13 = vpack.c.bf16 %v884_v23, %v884_v23 }
 0xb39   :  { %1788 = vmatmul.mubr.bf16.vlgmr.msra.gmra.mrb[32].mxu0 %v885_v13 }
 0xb3a   :  { %1812 = vmatpush3.bf16.msra.mxu0 %v2164_v37  ;;  %1827 = vmatprep.mubr.msk.bf16.mxu0 %vm1990_vm0, %v1989_v2 }
 0xb3b   :  { %1813 = vmatprep.subr.bf16.mxu0 %v1989_v2 }
 0xb3e   :  { %1814 = vmatpush3.bf16.msra.mxu0 %v2176_v39 }
 0xb3f   :  { %1815 = vmatprep.subr.bf16.mxu0 %v1989_v2 }
 0xb42   :  { %1816 = vmatpush3.bf16.msra.mxu0 %v2190_v41 }
 0xb43   :  { %1817 = vmatprep.subr.bf16.mxu0 %v1989_v2 }
 0xb46   :  { %1818 = vmatpush3.bf16.msra.mxu0 %v2199_v42 }
 0xb47   :  { %1819 = vmatprep.subr.bf16.mxu0 %v1989_v2 }
 0xb4a   :  { %1820 = vmatpush3.bf16.msra.mxu0 %v2208_v43  ;;  %v1028_v43 = vld [vmem:[%s2700_s7 + $0x18] sm:$0xff] }
 0xb4b   :  { %1821 = vmatprep.subr.bf16.mxu0 %v1989_v2 }
 0xb4e   :  { %1822 = vmatpush3.bf16.msra.mxu0 %v2217_v44 }
 0xb4f   :  { %1823 = vmatprep.subr.bf16.mxu0 %v1989_v2 }
 0xb52   :  { %1824 = vmatpush3.bf16.msra.mxu0 %v2238_v47 }
 0xb53   :  { %1825 = vmatprep.subr.bf16.mxu0 %v1989_v2  ;;  %v1027_v2 = vld [vmem:[%s2700_s7 + $0x10] sm:$0xff] }
 0xb54   :  { %v1911_v5 = vpack.c.bf16 %v1028_v43, %v1027_v2 }
 0xb56   :  { %1826 = vmatpush3.bf16.msra.mxu0 %v2251_v50 }
 0xc0c   :  { %v920_v37 = vpop.f32.mrb[32].mxu0 }
 0xc0d   :  { %v921_v39 = vadd.f32 %v2296_v6, %v920_v37  ;;  %v1789_v41 = vpop.f32.mrb[33].mxu0 }
 0xc0e   :  { %v923_v42 = vpop.f32.mrb[34].mxu0 }
 0xc0f   :  { %v926_v44 = vmax.f32 %v921_v39, 0.0  ;;  %v1790_v47 = vpop.f32.mrb[35].mxu0 }
 0xc11   :  { %1272 = vst [vmem:[%s2699_s10 + $0x30] sm:$0xff] %v926_v44  ;;  %v929_v50 = vpack.c.bf16 %v926_v44, %v926_v44 }
 0xc13   :  { %1808 = vmatmul.mubr.bf16.vlgmr.msra.gmra.mrb[28].mxu1 %v929_v50 }
 0xc14   :  { %1910 = vmatpush3.bf16.msra.mxu1 %v1907_v33  ;;  %1863 = vmatprep.mubr.f32.mxu1 %v2299_v12  ;;  %v1034_v12 = vld [vmem:[%s2700_s7 + $0x48] sm:$0xff] }
 0xc15   :  { %1912 = vmatprep.subr.bf16.mxu1 %v1911_v5  ;;  %v1923_v24 = vpack.c.bf16 %v1034_v12, %v1033_v22 }
 0xc18   :  { %1914 = vmatpush3.bf16.msra.mxu1 %v1911_v5 }
 0xc19   :  { %1916 = vmatprep.subr.bf16.mxu1 %v1915_v16 }
 0xc1c   :  { %1918 = vmatpush3.bf16.msra.mxu1 %v1915_v16 }
 0xc1d   :  { %1920 = vmatprep.subr.bf16.mxu1 %v1919_v21 }
 0xc20   :  { %1922 = vmatpush3.bf16.msra.mxu1 %v1919_v21 }
 0xc21   :  { %1924 = vmatprep.subr.bf16.mxu1 %v1923_v24 }
 0xc24   :  { %1926 = vmatpush3.bf16.msra.mxu1 %v1923_v24 }
 0xc25   :  { %1928 = vmatprep.subr.bf16.mxu1 %v1927_v28 }
 0xc28   :  { %1930 = vmatpush3.bf16.msra.mxu1 %v1927_v28 }
 0xc29   :  { %1932 = vmatprep.subr.bf16.mxu1 %v1931_v34 }
 0xc2c   :  { %1934 = vmatpush3.bf16.msra.mxu1 %v1931_v34 }
 0xc2d   :  { %1936 = vmatprep.subr.bf16.mxu1 %v1935_v36 }
 0xc30   :  { %1938 = vmatpush3.bf16.msra.mxu1 %v1935_v36 }
 0xc33   :  { %1864 = vmatmul.mubr.f32.vlgmr.msra.gmra.mrb[32].mxu1 %v2345_v32  ;;  %v1274_v32 = vld [vmem:[%s2701_s8] ss:$0 sm:$0xff] }
 0xc34   :  { %1866 = vmatprep.mubr.f32.mxu1 %v2392_v57 }
 0xc37   :  { %1867 = vmatmul.mubr.f32.gmra.mrb[34].mxu1 %v2439_v19 }
 0xc38   :  { %1869 = vmatprep.mubr.f32.mxu1 %v2486_v40 }
 0xc3b   :  { %1870 = vmatmul.mubr.f32.gmra.mrb[36].mxu1 %v2533_v63 }
 0xc3c   :  { %1872 = vmatprep.mubr.f32.mxu1 %v926_v44 }
 0xce6   :  { %v966_v45 = vpop.f32.mrb[28].mxu1 }
 0xce7   :  { %v967_v46 = vadd.f32 %v966_v45, %v168_v38  ;;  %v1809_v48 = vpop.f32.mrb[29].mxu1 }
 0xce8   :  { %v969_v49 = vpop.f32.mrb[30].mxu1 }
 0xce9   :  { %v972_v52 = vmax.f32 %v967_v46, 0.0  ;;  %v1810_v53 = vpop.f32.mrb[31].mxu1 }
 0xceb   :  { %v973_v54 = vpack.c.bf16 %v972_v52, %v972_v52 }
 0xced   :  { %1828 = vmatmul.mubr.bf16.vlgmr.msra.gmra.mrb[36].mxu0 %v973_v54 }
 0xd06   :  { %v1865_v57 = vpop.f32.mrb[32].mxu1 }
 0xd07   :  { %v1120_v19 = vadd.f32 %v1865_v57, %v1274_v32  ;;  %v1114_v40 = vpop.f32.mrb[33].mxu1 }
 0xd08   :  { %v1115_v56 = vadd.f32 %v1274_v32, %v1114_v40 }
 0xd09   :  { %1155 = vmax.xlane.f32.xlu0 %v1120_v19 }
 0xd0a   :  { %v1868_v55 = vpop.f32.mrb[34].mxu1 }
 0xd0b   :  { %v1130_v58 = vadd.f32 %v1868_v55, %v1274_v32  ;;  %v1124_v51 = vpop.f32.mrb[35].mxu1 }
 0xd0c   :  { %v1125_v0 = vadd.f32 %v1274_v32, %v1124_v51 }
 0xd0d   :  { %1159 = vmax.xlane.f32.xlu1 %v1130_v58  ;;  %1153 = vmax.xlane.f32.xlu0 %v1115_v56 }
 0xd0e   :  { %v1871_v3 = vpop.f32.mrb[36].mxu1 }
 0xd0f   :  { %v1134_v59 = vpop.f32.mrb[37].mxu1  ;;  %v1140_v62 = vadd.f32 %v1871_v3, %v1274_v32 }
 0xd10   :  { %v1135_v61 = vadd.f32 %v1274_v32, %v1134_v59 }
 0xd11   :  { %1157 = vmax.xlane.f32.xlu1 %v1125_v0 }
 0xd12   :  { %1161 = vmax.xlane.f32.xlu0 %v1135_v61 }
 0xd15   :  { %1163 = vmax.xlane.f32.xlu1 %v1140_v62 }
 0xd96   :  { %v1156_v18 = vpop.xlane.xlu0 %1155 }
 0xd97   :  { %v2644_v13 = vsub.f32 %v1120_v19, %v1156_v18 }
 0xd99   :  { %v1179_v31 = vmul.f32 1.442695, %v2644_v13 }
 0xd9a   :  { %v1160_v10 = vpop.xlane.xlu1 %1159  ;;  %v1154_v23 = vpop.xlane.xlu0 %1153 }
 0xd9b   :  { %v2646_v27 = vsub.f32 %v1115_v56, %v1154_v23  ;;  %1957 = vpow2.f32 %v1179_v31 }
 0xd9d   :  { %v1177_v33 = vmul.f32 1.442695, %v2646_v27 }
 0xd9e   :  { %v1158_v11 = vpop.xlane.xlu1 %1157 }
 0xd9f   :  { %v2652_v37 = vsub.f32 %v1125_v0, %v1158_v11  ;;  %v1162_v41 = vpop.xlane.xlu0 %1161  ;;  %1959 = vpow2.f32 %v1177_v33 }
 0xda0   :  { %v2658_v44 = vsub.f32 %v1135_v61, %v1162_v41 }
 0xda1   :  { %v1181_v43 = vmul.f32 1.442695, %v2652_v37 }
 0xda2   :  { %v1164_v39 = vpop.xlane.xlu1 %1163  ;;  %v1185_v5 = vmul.f32 1.442695, %v2658_v44 }
 0xda3   :  { %v2655_v2 = vsub.f32 %v1140_v62, %v1164_v39 }
 0xda5   :  { %v1187_v47 = vmul.f32 1.442695, %v2655_v2  ;;  %v1958_v17 = vpop.eup %1957 }
 0xda9   :  { %v1960_v20 = vpop.eup %1959 }
 0xdc0   :  { %v1008_v63 = vpop.f32.mrb[36].mxu0 }
 0xdc1   :  { %v1009_v7 = vadd.f32 %v2296_v6, %v1008_v63  ;;  %v1829_v9 = vpop.f32.mrb[37].mxu0  ;;  %v2649_v6 = vsub.f32 %v1130_v58, %v1160_v10 }
 0xdc2   :  { %v1011_v4 = vpop.f32.mrb[38].mxu0 }
 0xdc3   :  { %v1014_v8 = vmax.f32 %v1009_v7, 0.0  ;;  %v1830_v14 = vpop.f32.mrb[39].mxu0  ;;  %v1183_v42 = vmul.f32 1.442695, %v2649_v6 }
 0xdc5   :  { %1273 = vst [vmem:[%s2699_s10 + $0x38] sm:$0xff] %v1014_v8  ;;  %1873 = vmatmul.mubr.f32.gmra.mrb[38].mxu1 %v1014_v8  ;;  %1961 = vpow2.f32 %v1183_v42 }
 0xdc6   :  { %1963 = vpow2.f32 %v1181_v43 }
 0xdc7   :  { %1965 = vpow2.f32 %v1187_v47 }
 0xdc8   :  { %1967 = vpow2.f32 %v1185_v5 }
 0xdcf   :  { %v1962_v21 = vpop.eup %1961 }
 0xdd0   :  { %v1964_v22 = vpop.eup %1963 }
 0xdd1   :  { %v1966_v12 = vpop.eup %1965 }
 0xdd2   :  { %v1968_v24 = vpop.eup %1967 }
 0xe98   :  { %v1874_v50 = vpop.f32.mrb[38].mxu1 }
 0xe99   :  { %v1150_v60 = vadd.f32 %v1874_v50, %v1274_v32  ;;  %v1144_v15 = vpop.f32.mrb[39].mxu1 }
 0xe9a   :  { %v1145_v16 = vadd.f32 %v1274_v32, %v1144_v15 }
 0xe9b   :  { %1167 = vmax.xlane.f32.xlu1 %v1150_v60 }
 0xe9c   :  { %1165 = vmax.xlane.f32.xlu0 %v1145_v16 }
 0xe9f   :  { %1195 = vadd.xlane.f32.xlu1 %v1958_v17 }
 0xea0   :  { %1193 = vadd.xlane.f32.xlu0 %v1960_v20 }
 0xea3   :  { %1199 = vadd.xlane.f32.xlu1 %v1962_v21 }
 0xea4   :  { %1197 = vadd.xlane.f32.xlu0 %v1964_v22 }
 0xea7   :  { %1203 = vadd.xlane.f32.xlu1 %v1966_v12 }
 0xea8   :  { %1201 = vadd.xlane.f32.xlu0 %v1968_v24 }
 0xf28   :  { %v1168_v25 = vpop.xlane.xlu1 %1167 }
 0xf29   :  { %v1176_v26 = vsub.f32 %v1150_v60, %v1168_v25  ;;  %v1166_v28 = vpop.xlane.xlu0 %1165 }
 0xf2a   :  { %v1175_v29 = vsub.f32 %v1145_v16, %v1166_v28 }
 0xf2b   :  { %v1191_v30 = vmul.f32 1.442695, %v1176_v26 }
 0xf2c   :  { %v1189_v34 = vmul.f32 1.442695, %v1175_v29  ;;  %v1196_v1 = vpop.xlane.xlu1 %1195 }
 0xf2d   :  { %1969 = vpow2.f32 %v1191_v30  ;;  %v1194_v35 = vpop.xlane.xlu0 %1193 }
 0xf2e   :  { %1971 = vpow2.f32 %v1189_v34 }
 0xf2f   :  { %1973 = vlog2.f32 %v1196_v1 }
 0xf30   :  { %1975 = vlog2.f32 %v1194_v35  ;;  %v1200_v36 = vpop.xlane.xlu1 %1199 }
 0xf31   :  { %1977 = vlog2.f32 %v1200_v36  ;;  %v1198_v38 = vpop.xlane.xlu0 %1197 }
 0xf32   :  { %1979 = vlog2.f32 %v1198_v38 }
 0xf34   :  { %v1204_v45 = vpop.xlane.xlu1 %1203 }
 0xf35   :  { %1981 = vlog2.f32 %v1204_v45  ;;  %v1202_v46 = vpop.xlane.xlu0 %1201 }
 0xf36   :  { %1983 = vlog2.f32 %v1202_v46 }
 0xf37   :  { %v1970_v48 = vpop.eup %1969 }
 0xf38   :  { %v1972_v49 = vpop.eup %1971  ;;  %1207 = vadd.xlane.f32.xlu1 %v1970_v48 }
 0xf39   :  { %v1974_v52 = vpop.eup %1973  ;;  %1205 = vadd.xlane.f32.xlu0 %v1972_v49 }
 0xf3a   :  { %v1976_v53 = vpop.eup %1975  ;;  %v1212_v54 = vmul.f32 0.6931472, %v1974_v52 }
 0xf3b   :  { %v1978_v32 = vpop.eup %1977  ;;  %v1210_v57 = vmul.f32 0.6931472, %v1976_v53 }
 0xf3c   :  { %v1980_v19 = vpop.eup %1979  ;;  %v1226_v40 = vsub.f32 %v2644_v13, %v1212_v54  ;;  %v1216_v55 = vmul.f32 0.6931472, %v1978_v32 }
 0xf3d   :  { %v1225_v56 = vsub.f32 %v2646_v27, %v1210_v57  ;;  %v1214_v58 = vmul.f32 0.6931472, %v1980_v19 }
 0xf3e   :  { %1234 = vst [vmem:[%s2702_s9 + $0x8] sm:$0xff] %v1226_v40  ;;  %v1228_v51 = vsub.f32 %v2649_v6, %v1216_v55 }
 0xf3f   :  { %v1982_v3 = vpop.eup %1981  ;;  %1233 = vst [vmem:[%s2702_s9] sm:$0xff] %v1225_v56  ;;  %v1227_v0 = vsub.f32 %v2652_v37, %v1214_v58 }
 0xf40   :  { %v1984_v59 = vpop.eup %1983  ;;  %1236 = vst [vmem:[%s2702_s9 + $0x18] sm:$0xff] %v1228_v51  ;;  %v1220_v61 = vmul.f32 0.6931472, %v1982_v3 }
 0xf41   :  { %1235 = vst [vmem:[%s2702_s9 + $0x10] sm:$0xff] %v1227_v0  ;;  %v1218_v62 = vmul.f32 0.6931472, %v1984_v59 }
 0xf42   :  { %v1230_v63 = vsub.f32 %v2655_v2, %v1220_v61 }
 0xf43   :  { %v1229_v7 = vsub.f32 %v2658_v44, %v1218_v62 }
 0xf44   :  { %1238 = vst [vmem:[%s2702_s9 + $0x28] sm:$0xff] %v1230_v63 }
 0xf45   :  { %1237 = vst [vmem:[%s2702_s9 + $0x20] sm:$0xff] %v1229_v7 }
 0xfc5   :  { %v1208_v9 = vpop.xlane.xlu1 %1207 }
 0xfc6   :  { %1985 = vlog2.f32 %v1208_v9  ;;  %v1206_v4 = vpop.xlane.xlu0 %1205 }
 0xfc7   :  { %1987 = vlog2.f32 %v1206_v4 }
 0xfd0   :  { %v1986_v8 = vpop.eup %1985 }
 0xfd1   :  { %v1988_v14 = vpop.eup %1987  ;;  %v1224_v18 = vmul.f32 0.6931472, %v1986_v8 }
 0xfd2   :  { %v1222_v10 = vmul.f32 0.6931472, %v1988_v14 }
 0xfd3   :  { %v1232_v23 = vsub.f32 %v1176_v26, %v1224_v18 }
 0xfd4   :  { %v1231_v11 = vsub.f32 %v1175_v29, %v1222_v10 }
 0xfd5   :  { %1240 = vst [vmem:[%s2702_s9 + $0x38] sm:$0xff] %v1232_v23 }
 0xfd6   :  { %1239 = vst [vmem:[%s2702_s9 + $0x30] sm:$0xff] %v1231_v11 }

</bundles_post_ra>
